<compile_context>
chip_gen: v7x
topology: tpu7x:2x2x1
jax: 0.10.0
libtpu: 0.0.40
codegen_flags: <defaults>
</compile_context>

<pallas_src>
import jax
import jax.numpy as jnp
from jax.experimental import pallas as pl
from jax.experimental.pallas import tpu as pltpu

_INPUTS = 784
_N1 = 128
_N2 = 64
_N3 = 32
_OUT = 10

_LANE = 128        # lane-dense padded width for the narrow layers / output
_MAX_TILE_B = 512  # fills the 256-wide MXU on v6e/v7x, amortizes per-step overhead
_MIN_TILE_B = 128  # sublane-aligned minimum / full MXU M on v5e


def _pick_tile_b(b):
    """Prefer 512-row batch tiles; for mid-size batches shrink (in multiples of
    128) so the grid still has >=2 steps and both v7x TensorCores get work."""
    if b >= 2 * _MAX_TILE_B:
        return _MAX_TILE_B
    half_tiles = b // (2 * _MIN_TILE_B)
    return max(_MIN_TILE_B, min(_MAX_TILE_B, _MIN_TILE_B * half_tiles))


def _mlp_kernel(x_ref, w1_ref, b1_ref, w2_ref, b2_ref, w3_ref, b3_ref,
                w4_ref, b4_ref, o_ref):
    # layer 1: (TILE_B, 784) bf16 @ (784, 128) bf16 -> f32 accumulation
    h = jnp.dot(x_ref[...], w1_ref[...], preferred_element_type=jnp.float32)
    h = jnp.maximum(h + b1_ref[...], 0.0)                       # f32 VPU path

    # layer 2 (64 real cols, zero-padded to 128)
    h = jnp.dot(h.astype(jnp.bfloat16), w2_ref[...],
                preferred_element_type=jnp.float32)
    h = jnp.maximum(h + b2_ref[...], 0.0)

    # layer 3 (32 real cols, zero-padded to 128)
    h = jnp.dot(h.astype(jnp.bfloat16), w3_ref[...],
                preferred_element_type=jnp.float32)
    h = jnp.maximum(h + b3_ref[...], 0.0)

    # output layer (10 real cols, zero-padded to 128)
    logits = jnp.dot(h.astype(jnp.bfloat16), w4_ref[...],
                     preferred_element_type=jnp.float32)
    logits = logits + b4_ref[...]

    # mask padded columns to -inf so they vanish in the log-sum-exp
    col = jax.lax.broadcasted_iota(jnp.int32, logits.shape, 1)
    logits = jnp.where(col < _OUT, logits, -jnp.inf)

    # numerically-stable log_softmax over the (padded) feature axis, in f32
    m = jnp.max(logits, axis=-1, keepdims=True)
    shifted = logits - m
    lse = jnp.log(jnp.sum(jnp.exp(shifted), axis=-1, keepdims=True))
    o_ref[...] = (shifted - lse).astype(o_ref.dtype)   # bf16 writeback


def init_params(key):
    """nn.Linear-style U(-1/sqrt(fan_in), 1/sqrt(fan_in)) init.
    Weights stored (in_features, out_features); biases (1, out_features)."""
    dims = [_INPUTS, _N1, _N2, _N3, _OUT]
    params = []
    for i in range(4):
        fan_in, fan_out = dims[i], dims[i + 1]
        key, kw, kb = jax.random.split(key, 3)
        bound = 1.0 / (fan_in ** 0.5)
        w = jax.random.uniform(kw, (fan_in, fan_out), jnp.float32, -bound, bound)
        b = jax.random.uniform(kb, (1, fan_out), jnp.float32, -bound, bound)
        params.append((w, b))
    return params


def pack_params(params):
    """Pad narrow layers lane-dense (128) and cast weights to bf16 (biases f32)."""
    (w1, b1), (w2, b2), (w3, b3), (w4, b4) = params

    def pad_w(w, rows, cols):
        return jnp.pad(w, ((0, rows - w.shape[0]), (0, cols - w.shape[1])))

    def pad_b(b, cols):
        return jnp.pad(b, ((0, 0), (0, cols - b.shape[1])))

    w1p = w1.astype(jnp.bfloat16)                        # (784, 128)
    w2p = pad_w(w2, _N1, _LANE).astype(jnp.bfloat16)     # (128, 128) from (128, 64)
    w3p = pad_w(w3, _LANE, _LANE).astype(jnp.bfloat16)   # (128, 128) from (64, 32)
    w4p = pad_w(w4, _LANE, _LANE).astype(jnp.bfloat16)   # (128, 128) from (32, 10)
    b1p = b1.astype(jnp.float32)                         # (1, 128)
    b2p = pad_b(b2, _LANE).astype(jnp.float32)
    b3p = pad_b(b3, _LANE).astype(jnp.float32)
    b4p = pad_b(b4, _LANE).astype(jnp.float32)
    return (w1p, b1p, w2p, b2p, w3p, b3p, w4p, b4p)


def mlp_forward(x_nchw, packed):
    """x_nchw: (B, 1, 28, 28) float. Returns (B, 10) log-probs (float32)."""
    b = x_nchw.shape[0]
    # flatten + cast to bf16 BEFORE the batch pad (halves the pad-copy traffic)
    x = x_nchw.reshape(b, -1).astype(jnp.bfloat16)       # == x.view(B, -1)

    tile_b = _pick_tile_b(b)
    b_pad = tile_b * pl.cdiv(b, tile_b)
    if b_pad != b:
        x = jnp.pad(x, ((0, b_pad - b), (0, 0)))         # pad rows with zeros

    w1, b1, w2, b2, w3, b3, w4, b4 = packed
    grid = (b_pad // tile_b,)

    def resident(shape):
        # constant block index -> Pallas keeps the tile resident (fetched once)
        return pl.BlockSpec(shape, lambda i: (0, 0))

    in_specs = [
        pl.BlockSpec((tile_b, _INPUTS), lambda i: (i, 0)),  # x, tiled over batch
        resident((_INPUTS, _N1)), resident((1, _N1)),       # layer 1
        resident((_N1, _LANE)), resident((1, _LANE)),       # layer 2 (padded)
        resident((_LANE, _LANE)), resident((1, _LANE)),     # layer 3 (padded)
        resident((_LANE, _LANE)), resident((1, _LANE)),     # output (padded)
    ]
    out_spec = pl.BlockSpec((tile_b, _LANE), lambda i: (i, 0))

    flops = 2 * b_pad * (_INPUTS * _N1 + _N1 * _LANE + _LANE * _LANE + _LANE * _LANE)
    bytes_accessed = (
        x.size * 2
        + (w1.size + w2.size + w3.size + w4.size) * 2
        + (b1.size + b2.size + b3.size + b4.size) * 4
        + b_pad * _LANE * 2                                # bf16 output writeback
    )

    out = pl.pallas_call(
        _mlp_kernel,
        out_shape=jax.ShapeDtypeStruct((b_pad, _LANE), jnp.bfloat16),
        grid=grid,
        in_specs=in_specs,
        out_specs=out_spec,
        compiler_params=pltpu.CompilerParams(
            dimension_semantics=("parallel",),    # batch axis -> megacore on v7x
            vmem_limit_bytes=32 * 1024 * 1024,    # explicit budget; usage ~4 MiB
        ),
        cost_estimate=pl.CostEstimate(
            flops=int(flops),
            transcendentals=int(b_pad * (_LANE + 1)),   # exp per lane + log per row
            bytes_accessed=int(bytes_accessed),
        ),
    )(x, w1, b1, w2, b2, w3, b3, w4, b4)

    return out[:b, :_OUT].astype(jnp.float32)


def reference_forward(x_nchw, params):
    """Pure-JAX f32 reference matching the PyTorch module."""
    x = x_nchw.reshape(x_nchw.shape[0], -1).astype(jnp.float32)
    for i, (w, bb) in enumerate(params):
        x = x @ w + bb
        if i < 3:
            x = jnp.maximum(x, 0.0)
    return jax.nn.log_softmax(x, axis=-1)


def _check(x, params, packed):
    out = jax.block_until_ready(mlp_forward(x, packed))
    assert out.shape == (x.shape[0], _OUT), out.shape
    # sanity 1: log_softmax rows exponentiate-sum to ~1 (bf16 output precision)
    row_sums = jnp.sum(jnp.exp(out), axis=1)
    assert bool(jnp.all(jnp.abs(row_sums - 1.0) < 2e-2)), row_sums
    # sanity 2: matches the f32 reference up to bf16 matmul/output precision
    ref = reference_forward(x, params)
    max_err = jnp.max(jnp.abs(out - ref))
    assert bool(max_err < 0.1), max_err


if __name__ == "__main__":
    # tile-selection sanity (pure Python)
    assert _pick_tile_b(8) == 128
    assert _pick_tile_b(600) == 256
    assert _pick_tile_b(2048) == 512

    key = jax.random.PRNGKey(0)
    key, kx1, kx2 = jax.random.split(key, 3)
    params = init_params(key)
    packed = pack_params(params)

    # small batch, MNIST-shaped input (NCHW) -> single grid step
    x_small = jax.random.normal(kx1, (8, 1, 28, 28), jnp.float32)
    _check(x_small, params, packed)

    # larger batch -> multi-step batch grid (pad to 3 tiles of 128)
    x_big = jax.random.normal(kx2, (300, 1, 28, 28), jnp.float32)
    _check(x_big, params, packed)

    print("KERNEL_OK")
</pallas_src>

<mosaic_0001>
module attributes {stable_mosaic.version = 11 : i64} {
  func.func @_mlp_kernel(%arg0: i32, %arg1: memref<128x784xbf16, #tpu.memory_space<vmem>>, %arg2: memref<784x128xbf16, #tpu.memory_space<vmem>>, %arg3: memref<1x128xf32, #tpu.memory_space<vmem>>, %arg4: memref<128x128xbf16, #tpu.memory_space<vmem>>, %arg5: memref<1x128xf32, #tpu.memory_space<vmem>>, %arg6: memref<128x128xbf16, #tpu.memory_space<vmem>>, %arg7: memref<1x128xf32, #tpu.memory_space<vmem>>, %arg8: memref<128x128xbf16, #tpu.memory_space<vmem>>, %arg9: memref<1x128xf32, #tpu.memory_space<vmem>>, %arg10: memref<128x128xbf16, #tpu.memory_space<vmem>>) attributes {dimension_semantics = [#tpu.dimension_semantics<parallel>], iteration_bounds = array<i64: 1>, scalar_prefetch = 0 : i64, scratch_operands = 0 : i64, tpu.core_type = #tpu.core_type<tc>, window_params = [{transform_indices = @transform_0, window_bounds = array<i64: 128, 784>}, {pipeline_mode = #tpu.pipeline_mode<synchronous>, transform_indices = @transform_1, window_bounds = array<i64: 784, 128>}, {pipeline_mode = #tpu.pipeline_mode<synchronous>, transform_indices = @transform_2, window_bounds = array<i64: 1, 128>}, {pipeline_mode = #tpu.pipeline_mode<synchronous>, transform_indices = @transform_3, window_bounds = array<i64: 128, 128>}, {pipeline_mode = #tpu.pipeline_mode<synchronous>, transform_indices = @transform_4, window_bounds = array<i64: 1, 128>}, {pipeline_mode = #tpu.pipeline_mode<synchronous>, transform_indices = @transform_5, window_bounds = array<i64: 128, 128>}, {pipeline_mode = #tpu.pipeline_mode<synchronous>, transform_indices = @transform_6, window_bounds = array<i64: 1, 128>}, {pipeline_mode = #tpu.pipeline_mode<synchronous>, transform_indices = @transform_7, window_bounds = array<i64: 128, 128>}, {pipeline_mode = #tpu.pipeline_mode<synchronous>, transform_indices = @transform_8, window_bounds = array<i64: 1, 128>}, {transform_indices = @transform_9, window_bounds = array<i64: 128, 128>}]} {
    %c0 = arith.constant 0 : index
    %c0_0 = arith.constant 0 : index
    %0 = vector.load %arg1[%c0, %c0_0] : memref<128x784xbf16, #tpu.memory_space<vmem>>, vector<128x784xbf16>
    %c0_1 = arith.constant 0 : index
    %c0_2 = arith.constant 0 : index
    %1 = vector.load %arg2[%c0_1, %c0_2] : memref<784x128xbf16, #tpu.memory_space<vmem>>, vector<784x128xbf16>
    %cst = arith.constant dense<0.000000e+00> : vector<128x128xf32>
    %2 = tpu.matmul %0, %1, %cst {dimension_numbers = #tpu.dot_dimension_numbers<[1], [0], [0], [1], [0, 0, 1, 1], [], []>} : vector<128x784xbf16>, vector<784x128xbf16>, vector<128x128xf32> -> vector<128x128xf32>
    %c0_3 = arith.constant 0 : index
    %c0_4 = arith.constant 0 : index
    %3 = vector.load %arg3[%c0_3, %c0_4] : memref<1x128xf32, #tpu.memory_space<vmem>>, vector<1x128xf32>
    %4 = vector.broadcast %3 : vector<1x128xf32> to vector<128x128xf32>
    %5 = arith.addf %2, %4 : vector<128x128xf32>
    %cst_5 = arith.constant 0.000000e+00 : f32
    %6 = vector.broadcast %cst_5 : f32 to vector<128x128xf32>
    %7 = arith.maximumf %5, %6 : vector<128x128xf32>
    %8 = arith.truncf %7 : vector<128x128xf32> to vector<128x128xbf16>
    %c0_6 = arith.constant 0 : index
    %c0_7 = arith.constant 0 : index
    %9 = vector.load %arg4[%c0_6, %c0_7] : memref<128x128xbf16, #tpu.memory_space<vmem>>, vector<128x128xbf16>
    %cst_8 = arith.constant dense<0.000000e+00> : vector<128x128xf32>
    %10 = tpu.matmul %8, %9, %cst_8 {dimension_numbers = #tpu.dot_dimension_numbers<[1], [0], [0], [1], [0, 0, 1, 1], [], []>} : vector<128x128xbf16>, vector<128x128xbf16>, vector<128x128xf32> -> vector<128x128xf32>
    %c0_9 = arith.constant 0 : index
    %c0_10 = arith.constant 0 : index
    %11 = vector.load %arg5[%c0_9, %c0_10] : memref<1x128xf32, #tpu.memory_space<vmem>>, vector<1x128xf32>
    %12 = vector.broadcast %11 : vector<1x128xf32> to vector<128x128xf32>
    %13 = arith.addf %10, %12 : vector<128x128xf32>
    %cst_11 = arith.constant 0.000000e+00 : f32
    %14 = vector.broadcast %cst_11 : f32 to vector<128x128xf32>
    %15 = arith.maximumf %13, %14 : vector<128x128xf32>
    %16 = arith.truncf %15 : vector<128x128xf32> to vector<128x128xbf16>
    %c0_12 = arith.constant 0 : index
    %c0_13 = arith.constant 0 : index
    %17 = vector.load %arg6[%c0_12, %c0_13] : memref<128x128xbf16, #tpu.memory_space<vmem>>, vector<128x128xbf16>
    %cst_14 = arith.constant dense<0.000000e+00> : vector<128x128xf32>
    %18 = tpu.matmul %16, %17, %cst_14 {dimension_numbers = #tpu.dot_dimension_numbers<[1], [0], [0], [1], [0, 0, 1, 1], [], []>} : vector<128x128xbf16>, vector<128x128xbf16>, vector<128x128xf32> -> vector<128x128xf32>
    %c0_15 = arith.constant 0 : index
    %c0_16 = arith.constant 0 : index
    %19 = vector.load %arg7[%c0_15, %c0_16] : memref<1x128xf32, #tpu.memory_space<vmem>>, vector<1x128xf32>
    %20 = vector.broadcast %19 : vector<1x128xf32> to vector<128x128xf32>
    %21 = arith.addf %18, %20 : vector<128x128xf32>
    %cst_17 = arith.constant 0.000000e+00 : f32
    %22 = vector.broadcast %cst_17 : f32 to vector<128x128xf32>
    %23 = arith.maximumf %21, %22 : vector<128x128xf32>
    %24 = arith.truncf %23 : vector<128x128xf32> to vector<128x128xbf16>
    %c0_18 = arith.constant 0 : index
    %c0_19 = arith.constant 0 : index
    %25 = vector.load %arg8[%c0_18, %c0_19] : memref<128x128xbf16, #tpu.memory_space<vmem>>, vector<128x128xbf16>
    %cst_20 = arith.constant dense<0.000000e+00> : vector<128x128xf32>
    %26 = tpu.matmul %24, %25, %cst_20 {dimension_numbers = #tpu.dot_dimension_numbers<[1], [0], [0], [1], [0, 0, 1, 1], [], []>} : vector<128x128xbf16>, vector<128x128xbf16>, vector<128x128xf32> -> vector<128x128xf32>
    %c0_21 = arith.constant 0 : index
    %c0_22 = arith.constant 0 : index
    %27 = vector.load %arg9[%c0_21, %c0_22] : memref<1x128xf32, #tpu.memory_space<vmem>>, vector<1x128xf32>
    %28 = vector.broadcast %27 : vector<1x128xf32> to vector<128x128xf32>
    %29 = arith.addf %26, %28 : vector<128x128xf32>
    %30 = tpu.iota {dimensions = array<i32: 1>} : vector<128x128xi32>
    %c10_i32 = arith.constant 10 : i32
    %31 = vector.broadcast %c10_i32 : i32 to vector<128x128xi32>
    %32 = arith.cmpi slt, %30, %31 : vector<128x128xi32>
    %cst_23 = arith.constant 0xFF800000 : f32
    %33 = vector.broadcast %cst_23 : f32 to vector<128x128xf32>
    %34 = arith.select %32, %29, %33 : vector<128x128xi1>, vector<128x128xf32>
    %cst_24 = arith.constant dense<0xFF800000> : vector<128xf32>
    %35 = vector.multi_reduction <maximumf>, %34, %cst_24 [1] : vector<128x128xf32> to vector<128xf32>
    %36 = vector.shape_cast %35 : vector<128xf32> to vector<128x1xf32>
    %37 = vector.broadcast %36 : vector<128x1xf32> to vector<128x128xf32>
    %38 = arith.subf %34, %37 : vector<128x128xf32>
    %39 = math.exp %38 : vector<128x128xf32>
    %cst_25 = arith.constant dense<0.000000e+00> : vector<128xf32>
    %40 = vector.multi_reduction <add>, %39, %cst_25 [1] : vector<128x128xf32> to vector<128xf32>
    %41 = vector.shape_cast %40 : vector<128xf32> to vector<128x1xf32>
    %42 = math.log %41 : vector<128x1xf32>
    %43 = vector.broadcast %42 : vector<128x1xf32> to vector<128x128xf32>
    %44 = arith.subf %38, %43 : vector<128x128xf32>
    %45 = arith.truncf %44 : vector<128x128xf32> to vector<128x128xbf16>
    %c0_26 = arith.constant 0 : index
    %c0_27 = arith.constant 0 : index
    %46 = vector.load %arg10[%c0_26, %c0_27] : memref<128x128xbf16, #tpu.memory_space<vmem>>, vector<128x128xbf16>
    tpu.vector_store %arg10[%c0_26, %c0_27], %45 {strides = array<i32>} : memref<128x128xbf16, #tpu.memory_space<vmem>>, vector<128x128xbf16>,
    return
  }
  func.func @transform_0(%arg0: i32) -> (i32, i32) {
    %c0_i32 = arith.constant 0 : i32
    %c0_i32_0 = arith.constant 0 : i32
    return %arg0, %c0_i32 : i32, i32
  }
  func.func @transform_1(%arg0: i32) -> (i32, i32) {
    %c0_i32 = arith.constant 0 : i32
    %c0_i32_0 = arith.constant 0 : i32
    %c0_i32_1 = arith.constant 0 : i32
    return %c0_i32, %c0_i32_0 : i32, i32
  }
  func.func @transform_2(%arg0: i32) -> (i32, i32) {
    %c0_i32 = arith.constant 0 : i32
    %c0_i32_0 = arith.constant 0 : i32
    %c0_i32_1 = arith.constant 0 : i32
    return %c0_i32, %c0_i32_0 : i32, i32
  }
  func.func @transform_3(%arg0: i32) -> (i32, i32) {
    %c0_i32 = arith.constant 0 : i32
    %c0_i32_0 = arith.constant 0 : i32
    %c0_i32_1 = arith.constant 0 : i32
    return %c0_i32, %c0_i32_0 : i32, i32
  }
  func.func @transform_4(%arg0: i32) -> (i32, i32) {
    %c0_i32 = arith.constant 0 : i32
    %c0_i32_0 = arith.constant 0 : i32
    %c0_i32_1 = arith.constant 0 : i32
    return %c0_i32, %c0_i32_0 : i32, i32
  }
  func.func @transform_5(%arg0: i32) -> (i32, i32) {
    %c0_i32 = arith.constant 0 : i32
    %c0_i32_0 = arith.constant 0 : i32
    %c0_i32_1 = arith.constant 0 : i32
    return %c0_i32, %c0_i32_0 : i32, i32
  }
  func.func @transform_6(%arg0: i32) -> (i32, i32) {
    %c0_i32 = arith.constant 0 : i32
    %c0_i32_0 = arith.constant 0 : i32
    %c0_i32_1 = arith.constant 0 : i32
    return %c0_i32, %c0_i32_0 : i32, i32
  }
  func.func @transform_7(%arg0: i32) -> (i32, i32) {
    %c0_i32 = arith.constant 0 : i32
    %c0_i32_0 = arith.constant 0 : i32
    %c0_i32_1 = arith.constant 0 : i32
    return %c0_i32, %c0_i32_0 : i32, i32
  }
  func.func @transform_8(%arg0: i32) -> (i32, i32) {
    %c0_i32 = arith.constant 0 : i32
    %c0_i32_0 = arith.constant 0 : i32
    %c0_i32_1 = arith.constant 0 : i32
    return %c0_i32, %c0_i32_0 : i32, i32
  }
  func.func @transform_9(%arg0: i32) -> (i32, i32) {
    %c0_i32 = arith.constant 0 : i32
    %c0_i32_0 = arith.constant 0 : i32
    return %arg0, %c0_i32 : i32, i32
  }
}

</mosaic_0001>

<bundles_post_ra>
// kernel: tpu_custom_call.1
= control target key start
LH: loop header
LB: loop body
LE: loop exit
PB: predicated region body
PF: predicated region fallthrough
CT: control target
= control target key end

     0   :  { %vm777_vm0 = vcmask 130048   ;;  %s3548_s0 = inlined_call_operand.vmem [shape: bf16[128,784], index: 0, kind: input, shape index: {}]   ;;  %s3549_s1 = inlined_call_operand.vmem [shape: bf16[784,128], index: 1, kind: input, shape index: {}]   ;;  %s3550_s2 = inlined_call_operand.vmem [shape: f32[1,128], index: 2, kind: input, shape index: {}]   ;;  %s3551_s3 = inlined_call_operand.vmem [shape: bf16[128,128], index: 3, kind: input, shape index: {}]   ;;  %s3552_s4 = inlined_call_operand.vmem [shape: f32[1,128], index: 4, kind: input, shape index: {}]   ;;  %s3553_s5 = inlined_call_operand.vmem [shape: bf16[128,128], index: 5, kind: input, shape index: {}]   ;;  %s3554_s6 = inlined_call_operand.vmem [shape: f32[1,128], index: 6, kind: input, shape index: {}]   ;;  %s3555_s7 = inlined_call_operand.vmem [shape: bf16[128,128], index: 7, kind: input, shape index: {}]   ;;  %s3556_s8 = inlined_call_operand.vmem [shape: f32[1,128], index: 8, kind: input, shape index: {}]   ;;  %s3557_s9 = inlined_call_operand.hbm [shape: bf16[128,128], index: 9, kind: output, shape index: {}]  }
   0x1   :  { %v2627_v0 = vld [vmem:[%s3549_s1 + $0x40] sm:$0xff]   ;;  %v2631_v4 = vld [vmem:[%s3549_s1 + $0x48] sm:$0xff]   ;;  %v2635_v8 = vld [vmem:[%s3549_s1 + $0x50] sm:$0xff]  }
   0x2   :  { %v2628_v1 = vld [vmem:[%s3549_s1] sm:$0xff]   ;;  %2261 = vmatprep.subr.bf16.mxu0 %v2627_v0  ;;  %v2632_v5 = vld [vmem:[%s3549_s1 + $0x8] sm:$0xff]   ;;  %v2636_v9 = vld [vmem:[%s3549_s1 + $0x10] sm:$0xff]  }
   0x3   :  { %v2629_v2 = vld [vmem:[%s3549_s1 + $0xc0] sm:$0xff]   ;;  %2262 = vmatpush3.bf16.msra.mxu0 %v2628_v1  ;;  %v2633_v6 = vld [vmem:[%s3549_s1 + $0xc8] sm:$0xff]   ;;  %v2637_v10 = vld [vmem:[%s3549_s1 + $0xd0] sm:$0xff]  }
   0x4   :  { %v2630_v3 = vld [vmem:[%s3549_s1 + $0x80] sm:$0xff]   ;;  %2325 = vmatprep.subr.bf16.mxu1 %v2629_v2  ;;  %2263 = vmatprep.subr.bf16.mxu0 %v2631_v4  ;;  %v2634_v7 = vld [vmem:[%s3549_s1 + $0x88] sm:$0xff]   ;;  %v2638_v11 = vld [vmem:[%s3549_s1 + $0x90] sm:$0xff]  }
   0x5   :  { %2326 = vmatpush3.bf16.msra.mxu1 %v2630_v3  ;;  %v2639_v12 = vld [vmem:[%s3549_s1 + $0x58] sm:$0xff]   ;;  %v2643_v16 = vld [vmem:[%s3549_s1 + $0x60] sm:$0xff]   ;;  %v2647_v20 = vld [vmem:[%s3549_s1 + $0x68] sm:$0xff]  }
   0x6   :  { %2327 = vmatprep.subr.bf16.mxu1 %v2633_v6  ;;  %v2640_v13 = vld [vmem:[%s3549_s1 + $0x18] sm:$0xff]   ;;  %v2644_v17 = vld [vmem:[%s3549_s1 + $0x20] sm:$0xff]   ;;  %v2648_v21 = vld [vmem:[%s3549_s1 + $0x28] sm:$0xff]  }
   0x7   :  { %2264 = vmatpush3.bf16.msra.mxu0 %v2632_v5  ;;  %v2641_v14 = vld [vmem:[%s3549_s1 + $0xd8] sm:$0xff]   ;;  %v2645_v18 = vld [vmem:[%s3549_s1 + $0xe0] sm:$0xff]   ;;  %v2649_v22 = vld [vmem:[%s3549_s1 + $0xe8] sm:$0xff]  }
   0x8   :  { %2265 = vmatprep.subr.bf16.mxu0 %v2635_v8  ;;  %v2642_v15 = vld [vmem:[%s3549_s1 + $0x98] sm:$0xff]   ;;  %v2646_v19 = vld [vmem:[%s3549_s1 + $0xa0] sm:$0xff]   ;;  %v2650_v23 = vld [vmem:[%s3549_s1 + $0xa8] sm:$0xff]  }
   0x9   :  { %2328 = vmatpush3.bf16.msra.mxu1 %v2634_v7  ;;  %v2651_v24 = vld [vmem:[%s3549_s1 + $0x70] sm:$0xff]   ;;  %v2655_v28 = vld [vmem:[%s3549_s1 + $0x78] sm:$0xff]   ;;  %v2660_v32 = vld [vmem:[%s3548_s0 + $0x4] ss:$28 sps:$4 sm:$0xff]  }
   0xa   :  { %2329 = vmatprep.subr.bf16.mxu1 %v2637_v10  ;;  %v2652_v25 = vld [vmem:[%s3549_s1 + $0x30] sm:$0xff]   ;;  %v2656_v29 = vld [vmem:[%s3549_s1 + $0x38] sm:$0xff]   ;;  %834 = vmatprep.mubr.bf16.mxu0 %v2660_v32  ;;  %v2662_v34 = vld [vmem:[%s3549_s1 + $0x140] sm:$0xff]  }
   0xb   :  { %2266 = vmatpush3.bf16.msra.mxu0 %v2636_v9  ;;  %v2653_v26 = vld [vmem:[%s3549_s1 + $0xf0] sm:$0xff]   ;;  %v2657_v30 = vld [vmem:[%s3549_s1 + $0xf8] sm:$0xff]   ;;  %v2663_v35 = vld [vmem:[%s3548_s0 + $0x8] ss:$28 sps:$4 sm:$0xff]  }
   0xc   :  { %2267 = vmatprep.subr.bf16.mxu0 %v2639_v12  ;;  %v2654_v27 = vld [vmem:[%s3549_s1 + $0xb0] sm:$0xff]   ;;  %v2658_v31 = vld [vmem:[%s3548_s0] ss:$28 sps:$4 sm:$0xff]   ;;  %v2665_v36 = vld [vmem:[%s3548_s0 + $0xc] ss:$28 sps:$4 sm:$0xff]  }
   0xd   :  { %2330 = vmatpush3.bf16.msra.mxu1 %v2638_v11  ;;  %v2661_v33 = vld [vmem:[%s3549_s1 + $0xb8] sm:$0xff]   ;;  %v2666_v37 = vld [vmem:[%s3549_s1 + $0x100] sm:$0xff]   ;;  %931 = vmatprep.mubr.bf16.mxu1 %v2665_v36  ;;  %v2670_v40 = vld [vmem:[%s3549_s1 + $0x148] sm:$0xff]  }
   0xe   :  { %2331 = vmatprep.subr.bf16.mxu1 %v2641_v14  ;;  %v2667_v38 = vld [vmem:[%s3548_s0 + $0x3c] ss:$28 sps:$4 sm:$0xff]   ;;  %v2671_v41 = vld [vmem:[%s3548_s0 + $0x44] ss:$28 sps:$4 sm:$0xff]   ;;  %v2673_v42 = vld [vmem:[%s3549_s1 + $0x108] sm:$0xff]  }
   0xf   :  { %2268 = vmatpush3.bf16.msra.mxu0 %v2640_v13  ;;  %v2669_v39 = vld [vmem:[%s3548_s0 + $0x38] ss:$28 sps:$4 sm:$0xff]   ;;  %v2674_v43 = vld [vmem:[%s3548_s0 + $0x40] ss:$28 sps:$4 sm:$0xff]   ;;  %v2677_v48 = vld [vmem:[%s3548_s0 + $0x70] ss:$28 sps:$4 sm:$0xff]  }
  0x10   :  { %2269 = vmatprep.subr.bf16.mxu0 %v2643_v16  ;;  %v2675_v44 = vld [vmem:[%s3548_s0 + $0x74] ss:$28 sps:$4 sm:$0xff]   ;;  %v2679_v46 = vld [vmem:[%s3548_s0 + $0x7c] ss:$28 sps:$4 sm:$0xff]   ;;  %v2683_v49 = vld [vmem:[%s3548_s0 + $0xac] ss:$28 sps:$4 sm:$0xff]  }
  0x11   :  { %2332 = vmatpush3.bf16.msra.mxu1 %v2642_v15  ;;  %v2678_v45 = vld [vmem:[%s3549_s1 + $0x150] sm:$0xff]   ;;  %v2686_v50 = vld [vmem:[%s3549_s1 + $0x158] sm:$0xff]   ;;  %v2694_v54 = vld [vmem:[%s3549_s1 + $0x160] sm:$0xff]  }
  0x12   :  { %2333 = vmatprep.subr.bf16.mxu1 %v2645_v18  ;;  %v2681_v47 = vld [vmem:[%s3549_s1 + $0x110] sm:$0xff]   ;;  %v2689_v52 = vld [vmem:[%s3549_s1 + $0x118] sm:$0xff]   ;;  %v2685_v55 = vld [vmem:[%s3548_s0 + $0xa8] ss:$28 sps:$4 sm:$0xff]  }
  0x13   :  { %2270 = vmatpush3.bf16.msra.mxu0 %v2644_v17  ;;  %v2682_v51 = vld [vmem:[%s3548_s0 + $0x78] ss:$28 sps:$4 sm:$0xff]   ;;  %v2697_v56 = vld [vmem:[%s3549_s1 + $0x120] sm:$0xff]   ;;  %v2690_v59 = vld [vmem:[%s3548_s0 + $0xb0] ss:$28 sps:$4 sm:$0xff]  }
  0x14   :  { %2271 = vmatprep.subr.bf16.mxu0 %v2647_v20  ;;  %v2687_v53 = vld [vmem:[%s3548_s0 + $0xb4] ss:$28 sps:$4 sm:$0xff]   ;;  %v2691_v57 = vld [vmem:[%s3548_s0 + $0xe4] ss:$28 sps:$4 sm:$0xff]   ;;  %v2703_v60 = vld [vmem:[%s3549_s1 + $0x168] sm:$0xff]  }
  0x15   :  { %2334 = vmatpush3.bf16.msra.mxu1 %v2646_v19  ;;  %v2699_v58 = vld [vmem:[%s3549_s1 + $0x180] sm:$0xff]   ;;  %v2695_v61 = vld [vmem:[%s3548_s0 + $0xec] ss:$28 sps:$4 sm:$0xff]   ;;  %v2711_v0 = vld [vmem:[%s3549_s1 + $0x170] sm:$0xff]  }
  0x16   :  { %2335 = vmatprep.subr.bf16.mxu1 %v2649_v22  ;;  %v2706_v62 = vld [vmem:[%s3549_s1 + $0x128] sm:$0xff]   ;;  %v2693_v63 = vld [vmem:[%s3548_s0 + $0xe0] ss:$28 sps:$4 sm:$0xff]   ;;  %v2714_v2 = vld [vmem:[%s3549_s1 + $0x130] sm:$0xff]  }
  0x17   :  { %2272 = vmatpush3.bf16.msra.mxu0 %v2648_v21  ;;  %v2700_v1 = vld [vmem:[%s3548_s0 + $0x11c] ss:$28 sps:$4 sm:$0xff]   ;;  %v2698_v3 = vld [vmem:[%s3548_s0 + $0xe8] ss:$28 sps:$4 sm:$0xff]   ;;  %v2708_v8 = vld [vmem:[%s3548_s0 + $0x154] ss:$28 sps:$4 sm:$0xff]  }
  0x18   :  { %2273 = vmatprep.subr.bf16.mxu0 %v2651_v24  ;;  %v2704_v4 = vld [vmem:[%s3548_s0 + $0x124] ss:$28 sps:$4 sm:$0xff]   ;;  %v2719_v5 = vld [vmem:[%s3549_s1 + $0x178] sm:$0xff]   ;;  %v2710_v11 = vld [vmem:[%s3548_s0 + $0x150] ss:$28 sps:$4 sm:$0xff]  }
  0x19   :  { %2336 = vmatpush3.bf16.msra.mxu1 %v2650_v23  ;;  %v2722_v6 = vld [vmem:[%s3549_s1 + $0x138] sm:$0xff]   ;;  %v2716_v12 = vld [vmem:[%s3548_s0 + $0x18c] ss:$28 sps:$4 sm:$0xff]   ;;  %v2720_v14 = vld [vmem:[%s3548_s0 + $0x194] ss:$28 sps:$4 sm:$0xff]  }
  0x1a   :  { %2337 = vmatprep.subr.bf16.mxu1 %v2653_v26  ;;  %v2702_v7 = vld [vmem:[%s3548_s0 + $0x118] ss:$28 sps:$4 sm:$0xff]   ;;  %v2707_v9 = vld [vmem:[%s3548_s0 + $0x120] ss:$28 sps:$4 sm:$0xff]   ;;  %v2718_v15 = vld [vmem:[%s3548_s0 + $0x188] ss:$28 sps:$4 sm:$0xff]  }
  0x1b   :  { %2274 = vmatpush3.bf16.msra.mxu0 %v2652_v25  ;;  %v2712_v10 = vld [vmem:[%s3548_s0 + $0x15c] ss:$28 sps:$4 sm:$0xff]   ;;  %v2723_v16 = vld [vmem:[%s3548_s0 + $0x190] ss:$28 sps:$4 sm:$0xff]   ;;  %v2735_v22 = vld [vmem:[%s3548_s0 + $0x88] ss:$28 sps:$4 sm:$0xff]  }
  0x1c   :  { %2275 = vmatprep.subr.bf16.mxu0 %v2655_v28  ;;  %v2715_v13 = vld [vmem:[%s3548_s0 + $0x158] ss:$28 sps:$4 sm:$0xff]   ;;  %v2724_v19 = vld [vmem:[%s3548_s0 + $0x10] ss:$28 sps:$4 sm:$0xff]   ;;  %v2731_v23 = vld [vmem:[%s3548_s0 + $0x48] ss:$28 sps:$4 sm:$0xff]  }
  0x1d   :  { %2338 = vmatpush3.bf16.msra.mxu1 %v2654_v27  ;;  %v2726_v17 = vld [vmem:[%s3548_s0 + $0x14] ss:$28 sps:$4 sm:$0xff]   ;;  %v2729_v20 = vld [vmem:[%s3548_s0 + $0x4c] ss:$28 sps:$4 sm:$0xff]   ;;  %v2732_v24 = vld [vmem:[%s3548_s0 + $0x84] ss:$28 sps:$4 sm:$0xff]  }
  0x1e   :  { %2339 = vmatprep.subr.bf16.mxu1 %v2657_v30  ;;  %v2727_v18 = vld [vmem:[%s3548_s0 + $0x18] ss:$28 sps:$4 sm:$0xff]   ;;  %v2728_v21 = vld [vmem:[%s3548_s0 + $0x50] ss:$28 sps:$4 sm:$0xff]  }
  0x1f   :  { %2276 = vmatpush3.bf16.msra.mxu0 %v2656_v29 }
  0x20   :  { %2389 = vmatprep.subr.bf16.mxu0 %v2662_v34 }
  0x21   :  { %2340 = vmatpush3.bf16.msra.mxu1 %v2661_v33 }
  0x22   :  { %835 = vmatmul.mubr.bf16.vlgmr.msra.gmra.mrb[0].mxu0 %v2658_v31  ;;  %2510 = vmatprep.subr.bf16.mxu1 %v2699_v58 }
  0x23   :  { %2390 = vmatpush3.bf16.msra.mxu0 %v2666_v37  ;;  %842 = vmatprep.mubr.bf16.mxu0 %v2667_v38 }
  0x24   :  { %932 = vmatmul.mubr.bf16.vlgmr.msra.gmra.mrb[0].mxu1 %v2663_v35  ;;  %2391 = vmatprep.subr.bf16.mxu0 %v2670_v40 }
  0x25   :  { %939 = vmatprep.mubr.bf16.mxu1 %v2671_v41  ;;  %2511 = vmatpush3.bf16.msra.mxu1 %v2699_v58 }
  0x27   :  { %2392 = vmatpush3.bf16.msra.mxu0 %v2673_v42 }
  0x28   :  { %2393 = vmatprep.subr.bf16.mxu0 %v2678_v45 }
  0x2a   :  { %843 = vmatmul.mubr.bf16.gmra.mrb[4].mxu0 %v2669_v39 }
  0x2b   :  { %850 = vmatprep.mubr.bf16.mxu0 %v2675_v44  ;;  %2394 = vmatpush3.bf16.msra.mxu0 %v2681_v47 }
  0x2c   :  { %940 = vmatmul.mubr.bf16.gmra.mrb[4].mxu1 %v2674_v43  ;;  %2395 = vmatprep.subr.bf16.mxu0 %v2686_v50 }
  0x2d   :  { %947 = vmatprep.mubr.bf16.mxu1 %v2679_v46 }
  0x2f   :  { %2396 = vmatpush3.bf16.msra.mxu0 %v2689_v52 }
  0x30   :  { %2397 = vmatprep.subr.bf16.mxu0 %v2694_v54 }
  0x32   :  { %851 = vmatmul.mubr.bf16.gmra.mrb[8].mxu0 %v2677_v48 }
  0x33   :  { %858 = vmatprep.mubr.bf16.mxu0 %v2683_v49  ;;  %2398 = vmatpush3.bf16.msra.mxu0 %v2697_v56 }
  0x34   :  { %948 = vmatmul.mubr.bf16.gmra.mrb[8].mxu1 %v2682_v51  ;;  %2399 = vmatprep.subr.bf16.mxu0 %v2703_v60 }
  0x35   :  { %955 = vmatprep.mubr.bf16.mxu1 %v2687_v53 }
  0x37   :  { %2400 = vmatpush3.bf16.msra.mxu0 %v2706_v62 }
  0x38   :  { %2401 = vmatprep.subr.bf16.mxu0 %v2711_v0 }
  0x3a   :  { %859 = vmatmul.mubr.bf16.gmra.mrb[12].mxu0 %v2685_v55 }
  0x3b   :  { %866 = vmatprep.mubr.bf16.mxu0 %v2691_v57  ;;  %2402 = vmatpush3.bf16.msra.mxu0 %v2714_v2 }
  0x3c   :  { %956 = vmatmul.mubr.bf16.gmra.mrb[12].mxu1 %v2690_v59  ;;  %2403 = vmatprep.subr.bf16.mxu0 %v2719_v5 }
  0x3d   :  { %963 = vmatprep.mubr.bf16.mxu1 %v2695_v61 }
  0x3f   :  { %2404 = vmatpush3.bf16.msra.mxu0 %v2722_v6 }
  0x42   :  { %867 = vmatmul.mubr.bf16.gmra.mrb[16].mxu0 %v2693_v63 }
  0x43   :  { %874 = vmatprep.mubr.bf16.mxu0 %v2700_v1 }
  0x44   :  { %964 = vmatmul.mubr.bf16.gmra.mrb[16].mxu1 %v2698_v3 }
  0x45   :  { %971 = vmatprep.mubr.bf16.mxu1 %v2704_v4 }
  0x4a   :  { %875 = vmatmul.mubr.bf16.gmra.mrb[20].mxu0 %v2702_v7 }
  0x4b   :  { %882 = vmatprep.mubr.bf16.mxu0 %v2708_v8 }
  0x4c   :  { %972 = vmatmul.mubr.bf16.gmra.mrb[20].mxu1 %v2707_v9 }
  0x4d   :  { %979 = vmatprep.mubr.bf16.mxu1 %v2712_v10 }
  0x52   :  { %883 = vmatmul.mubr.bf16.gmra.mrb[24].mxu0 %v2710_v11 }
  0x53   :  { %890 = vmatprep.mubr.bf16.mxu0 %v2716_v12 }
  0x54   :  { %980 = vmatmul.mubr.bf16.gmra.mrb[24].mxu1 %v2715_v13 }
  0x55   :  { %987 = vmatprep.mubr.bf16.mxu1 %v2720_v14 }
  0x5a   :  { %891 = vmatmul.mubr.bf16.gmra.mrb[28].mxu0 %v2718_v15 }
  0x5b   :  { %1028 = vmatprep.mubr.bf16.mxu0 %v2726_v17 }
  0x5c   :  { %988 = vmatmul.mubr.bf16.gmra.mrb[28].mxu1 %v2723_v16 }
  0x5d   :  { %2512 = vmatprep.mubr.msk.bf16.mxu1 %vm777_vm0, %v2727_v18 }
  0x62   :  { %1029 = vmatmul.mubr.bf16.vlgmr.msra.gmra.mrb[32].mxu0 %v2724_v19 }
  0x63   :  { %1036 = vmatprep.mubr.bf16.mxu0 %v2729_v20 }
  0x64   :  { %2513 = vmatmul.mubr.msk.bf16.vlgmr.msra.gmra.mrb[32].mxu1 %vm777_vm0, %v2728_v21 }
  0x65   :  { %2516 = vmatprep.mubr.msk.bf16.mxu1 %vm777_vm0, %v2735_v22 }
  0x66   :  { %14 = vsyncpa [#allocation3], 0  ;;  %v2736_v25 = vld [vmem:[%s3548_s0 + $0xc0] ss:$28 sps:$4 sm:$0xff]   ;;  %v2743_v26 = vld [vmem:[%s3548_s0 + $0xf8] ss:$28 sps:$4 sm:$0xff]  }
  0x67   :  { %v2734_v27 = vld [vmem:[%s3548_s0 + $0x80] ss:$28 sps:$4 sm:$0xff]   ;;  %v2744_v29 = vld [vmem:[%s3548_s0 + $0x130] ss:$28 sps:$4 sm:$0xff]   ;;  %v2751_v30 = vld [vmem:[%s3548_s0 + $0x168] ss:$28 sps:$4 sm:$0xff]  }
  0x68   :  { %v2737_v28 = vld [vmem:[%s3548_s0 + $0xbc] ss:$28 sps:$4 sm:$0xff]   ;;  %v2740_v32 = vld [vmem:[%s3548_s0 + $0xf4] ss:$28 sps:$4 sm:$0xff]   ;;  %v2745_v35 = vld [vmem:[%s3548_s0 + $0x12c] ss:$28 sps:$4 sm:$0xff]  }
  0x69   :  { %v2739_v31 = vld [vmem:[%s3548_s0 + $0xb8] ss:$28 sps:$4 sm:$0xff]   ;;  %v2752_v33 = vld [vmem:[%s3548_s0 + $0x1a0] ss:$28 sps:$4 sm:$0xff]   ;;  %v2742_v34 = vld [vmem:[%s3548_s0 + $0xf0] ss:$28 sps:$4 sm:$0xff]  }
  0x6a   :  { %1037 = vmatmul.mubr.bf16.gmra.mrb[36].mxu0 %v2731_v23  ;;  %v2747_v36 = vld [vmem:[%s3548_s0 + $0x128] ss:$28 sps:$4 sm:$0xff]   ;;  %v2750_v38 = vld [vmem:[%s3548_s0 + $0x160] ss:$28 sps:$4 sm:$0xff]   ;;  %v2755_v40 = vld [vmem:[%s3548_s0 + $0x198] ss:$28 sps:$4 sm:$0xff]  }
  0x6b   :  { %1044 = vmatprep.mubr.bf16.mxu0 %v2732_v24  ;;  %v2748_v37 = vld [vmem:[%s3548_s0 + $0x164] ss:$28 sps:$4 sm:$0xff]   ;;  %v2753_v39 = vld [vmem:[%s3548_s0 + $0x19c] ss:$28 sps:$4 sm:$0xff]   ;;  %v2757_v42 = vld [vmem:[%s3551_s3 + $0x8] sm:$0xff]  }
  0x6c   :  { %2517 = vmatmul.mubr.msk.bf16.gmra.mrb[36].mxu1 %vm777_vm0, %v2736_v25  ;;  %v2756_v41 = vld [vmem:[%s3551_s3] sm:$0xff]   ;;  %v2758_v43 = vld [vmem:[%s3551_s3 + $0x10] sm:$0xff]   ;;  %v2759_v44 = vld [vmem:[%s3551_s3 + $0x18] sm:$0xff]  }
  0x6d   :  { %2520 = vmatprep.mubr.msk.bf16.mxu1 %vm777_vm0, %v2743_v26  ;;  %2528 = vmatprep.subr.bf16.mxu1 %v2756_v41  ;;  %v2760_v45 = vld [vmem:[%s3551_s3 + $0x20] sm:$0xff]   ;;  %v2761_v46 = vld [vmem:[%s3551_s3 + $0x28] sm:$0xff]   ;;  %v2762_v47 = vld [vmem:[%s3551_s3 + $0x30] sm:$0xff]  }
  0x6e   :  { %2529 = vmatpush3.bf16.msra.mxu1 %v2756_v41  ;;  %v2763_v48 = vld [vmem:[%s3551_s3 + $0x38] sm:$0xff]   ;;  %v3271_v50 = vld [vmem:[%s3550_s2] ss:$0 sm:$0xff]  ;;  %v2765_v0 = vld [vmem:[%s3553_s5 + $0x8] sm:$0xff]  }
  0x6f   :  { %2530 = vmatprep.subr.bf16.mxu1 %v2757_v42  ;;  %v2764_v63 = vld [vmem:[%s3553_s5] sm:$0xff]   ;;  %v2766_v8 = vld [vmem:[%s3553_s5 + $0x10] sm:$0xff]   ;;  %v2767_v18 = vld [vmem:[%s3553_s5 + $0x18] sm:$0xff]  }
  0x70   :  { %2560 = vmatprep.subr.bf16.mxu0 %v2764_v63  ;;  %v2768_v26 = vld [vmem:[%s3553_s5 + $0x20] sm:$0xff]  }
  0x71   :  { %2561 = vmatpush3.bf16.msra.mxu0 %v2764_v63 }
  0x72   :  { %1045 = vmatmul.mubr.bf16.gmra.mrb[40].mxu0 %v2734_v27  ;;  %2531 = vmatpush3.bf16.msra.mxu1 %v2757_v42 }
  0x73   :  { %1052 = vmatprep.mubr.bf16.mxu0 %v2737_v28  ;;  %2532 = vmatprep.subr.bf16.mxu1 %v2758_v43 }
  0x74   :  { %2521 = vmatmul.mubr.msk.bf16.gmra.mrb[40].mxu1 %vm777_vm0, %v2744_v29  ;;  %2562 = vmatprep.subr.bf16.mxu0 %v2765_v0 }
  0x75   :  { %2524 = vmatprep.mubr.msk.bf16.mxu1 %vm777_vm0, %v2751_v30  ;;  %2563 = vmatpush3.bf16.msra.mxu0 %v2765_v0 }
  0x76   :  { %2533 = vmatpush3.bf16.msra.mxu1 %v2758_v43  ;;  %2564 = vmatprep.subr.bf16.mxu0 %v2766_v8 }
  0x77   :  { %2534 = vmatprep.subr.bf16.mxu1 %v2759_v44 }
  0x79   :  { %2565 = vmatpush3.bf16.msra.mxu0 %v2766_v8 }
  0x7a   :  { %1053 = vmatmul.mubr.bf16.gmra.mrb[44].mxu0 %v2739_v31  ;;  %2535 = vmatpush3.bf16.msra.mxu1 %v2759_v44 }
  0x7b   :  { %1060 = vmatprep.mubr.bf16.mxu0 %v2740_v32  ;;  %2536 = vmatprep.subr.bf16.mxu1 %v2760_v45 }
  0x7c   :  { %2525 = vmatmul.mubr.msk.bf16.gmra.mrb[44].mxu1 %vm777_vm0, %v2752_v33  ;;  %2566 = vmatprep.subr.bf16.mxu0 %v2767_v18 }
  0x7d   :  { %2567 = vmatpush3.bf16.msra.mxu0 %v2767_v18 }
  0x7e   :  { %2537 = vmatpush3.bf16.msra.mxu1 %v2760_v45  ;;  %2568 = vmatprep.subr.bf16.mxu0 %v2768_v26 }
  0x7f   :  { %2538 = vmatprep.subr.bf16.mxu1 %v2761_v46 }
  0x81   :  { %2569 = vmatpush3.bf16.msra.mxu0 %v2768_v26 }
  0x82   :  { %1061 = vmatmul.mubr.bf16.gmra.mrb[48].mxu0 %v2742_v34  ;;  %2539 = vmatpush3.bf16.msra.mxu1 %v2761_v46 }
  0x83   :  { %1068 = vmatprep.mubr.bf16.mxu0 %v2745_v35  ;;  %2540 = vmatprep.subr.bf16.mxu1 %v2762_v47 }
  0x86   :  { %2541 = vmatpush3.bf16.msra.mxu1 %v2762_v47 }
  0x87   :  { %2542 = vmatprep.subr.bf16.mxu1 %v2763_v48 }
  0x8a   :  { %1069 = vmatmul.mubr.bf16.gmra.mrb[52].mxu0 %v2747_v36  ;;  %2543 = vmatpush3.bf16.msra.mxu1 %v2763_v48  ;;  %v2769_v36 = vld [vmem:[%s3553_s5 + $0x28] sm:$0xff]  }
  0x8b   :  { %1076 = vmatprep.mubr.bf16.mxu0 %v2748_v37  ;;  %2570 = vmatprep.subr.bf16.mxu0 %v2769_v36 }
  0x8c   :  { %2571 = vmatpush3.bf16.msra.mxu0 %v2769_v36 }
  0x92   :  { %1077 = vmatmul.mubr.bf16.gmra.mrb[56].mxu0 %v2750_v38 }
  0x93   :  { %1084 = vmatprep.mubr.bf16.mxu0 %v2753_v39 }
  0x9a   :  { %1085 = vmatmul.mubr.bf16.gmra.mrb[60].mxu0 %v2755_v40 }
  0xf5   :  { %v2277_v49 = vpop.f32.mrb[0].mxu0 }
  0xf6   :  { %v2278_v51 = vpop.f32.mrb[1].mxu0 }
  0xf7   :  { %v2279_v52 = vadd.f32 %v2278_v51, %v2277_v49  ;;  %v2280_v53 = vpop.f32.mrb[2].mxu0  ;;  %v2341_v54 = vpop.f32.mrb[0].mxu1 }
  0xf8   :  { %v2281_v55 = vpop.f32.mrb[3].mxu0  ;;  %v2342_v58 = vpop.f32.mrb[1].mxu1 }
  0xf9   :  { %v837_v56 = vadd.f32 %v2279_v52, %v3271_v50  ;;  %v2282_v57 = vadd.f32 %v2281_v55, %v2280_v53  ;;  %v2343_v59 = vadd.f32 %v2342_v58, %v2341_v54  ;;  %v2344_v60 = vpop.f32.mrb[2].mxu1 }
  0xfa   :  { %v2345_v62 = vpop.f32.mrb[3].mxu1 }
  0xfb   :  { %v840_v61 = vadd.f32 %v2282_v57, %v3271_v50  ;;  %v3281_v1 = vadd.f32 %v2343_v59, %v837_v56  ;;  %v2346_v2 = vadd.f32 %v2345_v62, %v2344_v60 }
  0xfd   :  { %v2283_v3 = vpop.f32.mrb[4].mxu0  ;;  %v3283_v4 = vadd.f32 %v2346_v2, %v840_v61 }
  0xfe   :  { %v2284_v5 = vpop.f32.mrb[5].mxu0 }
  0xff   :  { %v2285_v6 = vadd.f32 %v2284_v5, %v2283_v3  ;;  %v2286_v7 = vpop.f32.mrb[6].mxu0  ;;  %v2347_v9 = vpop.f32.mrb[4].mxu1 }
 0x100   :  { %v2287_v10 = vpop.f32.mrb[7].mxu0  ;;  %v2348_v13 = vpop.f32.mrb[5].mxu1 }
 0x101   :  { %v845_v11 = vadd.f32 %v2285_v6, %v3271_v50  ;;  %v2288_v12 = vadd.f32 %v2287_v10, %v2286_v7  ;;  %v2349_v14 = vadd.f32 %v2348_v13, %v2347_v9  ;;  %v2350_v15 = vpop.f32.mrb[6].mxu1 }
 0x102   :  { %v2351_v17 = vpop.f32.mrb[7].mxu1 }
 0x103   :  { %v848_v16 = vadd.f32 %v2288_v12, %v3271_v50  ;;  %v3293_v19 = vadd.f32 %v2349_v14, %v845_v11  ;;  %v2352_v20 = vadd.f32 %v2351_v17, %v2350_v15 }
 0x105   :  { %v2289_v21 = vpop.f32.mrb[8].mxu0  ;;  %v3295_v22 = vadd.f32 %v2352_v20, %v848_v16 }
 0x106   :  { %v2290_v23 = vpop.f32.mrb[9].mxu0 }
 0x107   :  { %v2291_v24 = vadd.f32 %v2290_v23, %v2289_v21  ;;  %v2292_v25 = vpop.f32.mrb[10].mxu0  ;;  %v2353_v27 = vpop.f32.mrb[8].mxu1 }
 0x108   :  { %v2293_v28 = vpop.f32.mrb[11].mxu0  ;;  %v2354_v31 = vpop.f32.mrb[9].mxu1 }
 0x109   :  { %v853_v29 = vadd.f32 %v2291_v24, %v3271_v50  ;;  %v2294_v30 = vadd.f32 %v2293_v28, %v2292_v25  ;;  %v2355_v32 = vadd.f32 %v2354_v31, %v2353_v27  ;;  %v2356_v33 = vpop.f32.mrb[10].mxu1 }
 0x10a   :  { %v2357_v35 = vpop.f32.mrb[11].mxu1 }
 0x10b   :  { %v856_v34 = vadd.f32 %v2294_v30, %v3271_v50  ;;  %v3305_v37 = vadd.f32 %v2355_v32, %v853_v29  ;;  %v2358_v38 = vadd.f32 %v2357_v35, %v2356_v33 }
 0x10d   :  { %v2295_v39 = vpop.f32.mrb[12].mxu0  ;;  %v3307_v40 = vadd.f32 %v2358_v38, %v856_v34 }
 0x10e   :  { %v2296_v41 = vpop.f32.mrb[13].mxu0 }
 0x10f   :  { %v2297_v42 = vadd.f32 %v2296_v41, %v2295_v39  ;;  %v2298_v43 = vpop.f32.mrb[14].mxu0  ;;  %v2359_v44 = vpop.f32.mrb[12].mxu1 }
 0x110   :  { %v2299_v45 = vpop.f32.mrb[15].mxu0  ;;  %v2360_v48 = vpop.f32.mrb[13].mxu1 }
 0x111   :  { %v861_v46 = vadd.f32 %v2297_v42, %v3271_v50  ;;  %v2300_v47 = vadd.f32 %v2299_v45, %v2298_v43  ;;  %v2361_v49 = vadd.f32 %v2360_v48, %v2359_v44  ;;  %v2362_v51 = vpop.f32.mrb[14].mxu1 }
 0x112   :  { %v2363_v53 = vpop.f32.mrb[15].mxu1 }
 0x113   :  { %v864_v52 = vadd.f32 %v2300_v47, %v3271_v50  ;;  %v3311_v54 = vadd.f32 %v2361_v49, %v861_v46  ;;  %v2364_v55 = vadd.f32 %v2363_v53, %v2362_v51 }
 0x115   :  { %v2301_v56 = vpop.f32.mrb[16].mxu0  ;;  %v3313_v57 = vadd.f32 %v2364_v55, %v864_v52 }
 0x116   :  { %v2302_v58 = vpop.f32.mrb[17].mxu0 }
 0x117   :  { %v2303_v59 = vadd.f32 %v2302_v58, %v2301_v56  ;;  %v2304_v60 = vpop.f32.mrb[18].mxu0  ;;  %v2365_v61 = vpop.f32.mrb[16].mxu1 }
 0x118   :  { %v2305_v62 = vpop.f32.mrb[19].mxu0  ;;  %v2366_v2 = vpop.f32.mrb[17].mxu1 }
 0x119   :  { %v869_v63 = vadd.f32 %v2303_v59, %v3271_v50  ;;  %v2306_v0 = vadd.f32 %v2305_v62, %v2304_v60  ;;  %v2367_v3 = vadd.f32 %v2366_v2, %v2365_v61  ;;  %v2368_v5 = vpop.f32.mrb[18].mxu1 }
 0x11a   :  { %v2369_v7 = vpop.f32.mrb[19].mxu1 }
 0x11b   :  { %v872_v6 = vadd.f32 %v2306_v0, %v3271_v50  ;;  %v3317_v8 = vadd.f32 %v2367_v3, %v869_v63  ;;  %v2370_v9 = vadd.f32 %v2369_v7, %v2368_v5 }
 0x11d   :  { %v2307_v10 = vpop.f32.mrb[20].mxu0  ;;  %v3319_v11 = vadd.f32 %v2370_v9, %v872_v6 }
 0x11e   :  { %v2308_v12 = vpop.f32.mrb[21].mxu0 }
 0x11f   :  { %v2309_v13 = vadd.f32 %v2308_v12, %v2307_v10  ;;  %v2310_v14 = vpop.f32.mrb[22].mxu0  ;;  %v2371_v15 = vpop.f32.mrb[20].mxu1 }
 0x120   :  { %v2311_v16 = vpop.f32.mrb[23].mxu0  ;;  %v2372_v20 = vpop.f32.mrb[21].mxu1 }
 0x121   :  { %v877_v17 = vadd.f32 %v2309_v13, %v3271_v50  ;;  %v2312_v18 = vadd.f32 %v2311_v16, %v2310_v14  ;;  %v2373_v21 = vadd.f32 %v2372_v20, %v2371_v15  ;;  %v2374_v23 = vpop.f32.mrb[22].mxu1 }
 0x122   :  { %v2375_v25 = vpop.f32.mrb[23].mxu1 }
 0x123   :  { %v880_v24 = vadd.f32 %v2312_v18, %v3271_v50  ;;  %v3323_v26 = vadd.f32 %v2373_v21, %v877_v17  ;;  %v2376_v27 = vadd.f32 %v2375_v25, %v2374_v23 }
 0x125   :  { %v2313_v28 = vpop.f32.mrb[24].mxu0  ;;  %v3325_v29 = vadd.f32 %v2376_v27, %v880_v24 }
 0x126   :  { %v2314_v30 = vpop.f32.mrb[25].mxu0 }
 0x127   :  { %v2315_v31 = vadd.f32 %v2314_v30, %v2313_v28  ;;  %v2316_v32 = vpop.f32.mrb[26].mxu0  ;;  %v2377_v33 = vpop.f32.mrb[24].mxu1 }
 0x128   :  { %v2317_v34 = vpop.f32.mrb[27].mxu0  ;;  %v2378_v38 = vpop.f32.mrb[25].mxu1 }
 0x129   :  { %v885_v35 = vadd.f32 %v2315_v31, %v3271_v50  ;;  %v2318_v36 = vadd.f32 %v2317_v34, %v2316_v32  ;;  %v2379_v39 = vadd.f32 %v2378_v38, %v2377_v33  ;;  %v2380_v41 = vpop.f32.mrb[26].mxu1 }
 0x12a   :  { %v2381_v43 = vpop.f32.mrb[27].mxu1 }
 0x12b   :  { %v888_v42 = vadd.f32 %v2318_v36, %v3271_v50  ;;  %v3329_v44 = vadd.f32 %v2379_v39, %v885_v35  ;;  %v2382_v45 = vadd.f32 %v2381_v43, %v2380_v41 }
 0x12d   :  { %v2319_v46 = vpop.f32.mrb[28].mxu0  ;;  %v3331_v47 = vadd.f32 %v2382_v45, %v888_v42 }
 0x12e   :  { %v2320_v48 = vpop.f32.mrb[29].mxu0 }
 0x12f   :  { %v2321_v49 = vadd.f32 %v2320_v48, %v2319_v46  ;;  %v2322_v51 = vpop.f32.mrb[30].mxu0  ;;  %v2383_v52 = vpop.f32.mrb[28].mxu1 }
 0x130   :  { %v2323_v53 = vpop.f32.mrb[31].mxu0  ;;  %v2384_v58 = vpop.f32.mrb[29].mxu1 }
 0x131   :  { %v893_v55 = vadd.f32 %v2321_v49, %v3271_v50  ;;  %v2324_v56 = vadd.f32 %v2323_v53, %v2322_v51  ;;  %v2385_v59 = vadd.f32 %v2384_v58, %v2383_v52  ;;  %v2386_v60 = vpop.f32.mrb[30].mxu1 }
 0x132   :  { %v2387_v62 = vpop.f32.mrb[31].mxu1 }
 0x133   :  { %v896_v61 = vadd.f32 %v2324_v56, %v3271_v50  ;;  %v3335_v63 = vadd.f32 %v2385_v59, %v893_v55  ;;  %v2388_v0 = vadd.f32 %v2387_v62, %v2386_v60 }
 0x135   :  { %v2405_v2 = vpop.f32.mrb[32].mxu0  ;;  %v3337_v3 = vadd.f32 %v2388_v0, %v896_v61 }
 0x136   :  { %v2406_v5 = vpop.f32.mrb[33].mxu0 }
 0x137   :  { %v2407_v6 = vadd.f32 %v2406_v5, %v2405_v2  ;;  %v2408_v7 = vpop.f32.mrb[34].mxu0  ;;  %v2514_v10 = vpop.f32.mrb[32].mxu1 }
 0x138   :  { %v2409_v9 = vpop.f32.mrb[35].mxu0  ;;  %v1127_v14 = vpop.f32.mrb[33].mxu1 }
 0x139   :  { %v2410_v12 = vadd.f32 %v2409_v9, %v2408_v7  ;;  %v1031_v13 = vadd.f32 %v2407_v6, %v3281_v1  ;;  %v2515_v15 = vpop.f32.mrb[34].mxu1 }
 0x13a   :  { %v1130_v17 = vpop.f32.mrb[35].mxu1 }
 0x13b   :  { %v1128_v16 = vadd.f32 %v1127_v14, %v1031_v13  ;;  %v1034_v50 = vadd.f32 %v2410_v12, %v3283_v4 }
 0x13d   :  { %v1131_v18 = vadd.f32 %v1130_v17, %v1034_v50  ;;  %v2411_v20 = vpop.f32.mrb[36].mxu0  ;;  %v1190_v23 = vmax.f32 %v1128_v16, 0.0 }
 0x13e   :  { %v2412_v21 = vpop.f32.mrb[37].mxu0 }
 0x13f   :  { %v1191_v24 = vmax.f32 %v1131_v18, 0.0  ;;  %v2413_v25 = vadd.f32 %v2412_v21, %v2411_v20  ;;  %v2414_v27 = vpop.f32.mrb[38].mxu0  ;;  %v2518_v30 = vpop.f32.mrb[36].mxu1 }
 0x140   :  { %v2415_v28 = vpop.f32.mrb[39].mxu0  ;;  %v1143_v1 = vpop.f32.mrb[37].mxu1 }
 0x141   :  { %v1206_v31 = vpack.c.bf16 %v1191_v24, %v1190_v23  ;;  %v1039_v32 = vadd.f32 %v2413_v25, %v3293_v19  ;;  %v2416_v33 = vadd.f32 %v2415_v28, %v2414_v27  ;;  %v2519_v34 = vpop.f32.mrb[38].mxu1 }
 0x142   :  { %v1146_v4 = vpop.f32.mrb[39].mxu1 }
 0x143   :  { %v1136_v35 = vadd.f32 %v2514_v10, %v1039_v32  ;;  %v1042_v36 = vadd.f32 %v2416_v33, %v3295_v22  ;;  %2544 = vmatprep.mubr.bf16.mxu1 %v1206_v31 }
 0x145   :  { %v1139_v38 = vadd.f32 %v2515_v15, %v1042_v36  ;;  %v2417_v39 = vpop.f32.mrb[40].mxu0  ;;  %v1192_v42 = vmax.f32 %v1136_v35, 0.0 }
 0x146   :  { %v2418_v41 = vpop.f32.mrb[41].mxu0 }
 0x147   :  { %v1193_v43 = vmax.f32 %v1139_v38, 0.0  ;;  %v2419_v45 = vadd.f32 %v2418_v41, %v2417_v39  ;;  %v2420_v46 = vpop.f32.mrb[42].mxu0  ;;  %v2522_v49 = vpop.f32.mrb[40].mxu1 }
 0x148   :  { %v2421_v48 = vpop.f32.mrb[43].mxu0  ;;  %v1159_v53 = vpop.f32.mrb[41].mxu1 }
 0x149   :  { %v1207_v51 = vpack.c.bf16 %v1193_v43, %v1192_v42  ;;  %v2422_v52 = vadd.f32 %v2421_v48, %v2420_v46  ;;  %v1047_v19 = vadd.f32 %v2419_v45, %v3305_v37  ;;  %v2523_v55 = vpop.f32.mrb[42].mxu1 }
 0x14a   :  { %v1162_v58 = vpop.f32.mrb[43].mxu1 }
 0x14b   :  { %v1144_v56 = vadd.f32 %v1143_v1, %v1047_v19  ;;  %2545 = vmatmul.mubr.bf16.vlgmr.msra.gmra.mrb[48].mxu1 %v1207_v51  ;;  %v1050_v22 = vadd.f32 %v2422_v52, %v3307_v40 }
 0x14d   :  { %v1147_v59 = vadd.f32 %v1146_v4, %v1050_v22  ;;  %v2423_v60 = vpop.f32.mrb[44].mxu0  ;;  %v1194_v62 = vmax.f32 %v1144_v56, 0.0 }
 0x14e   :  { %v2424_v61 = vpop.f32.mrb[45].mxu0 }
 0x14f   :  { %v1195_v0 = vmax.f32 %v1147_v59, 0.0  ;;  %v2425_v2 = vadd.f32 %v2424_v61, %v2423_v60  ;;  %v2426_v5 = vpop.f32.mrb[46].mxu0  ;;  %v3345_v7 = vpop.f32.mrb[44].mxu1 }
 0x150   :  { %v2427_v6 = vpop.f32.mrb[47].mxu0  ;;  %v1175_v12 = vpop.f32.mrb[45].mxu1 }
 0x151   :  { %v1208_v9 = vpack.c.bf16 %v1195_v0, %v1194_v62  ;;  %v1055_v37 = vadd.f32 %v2425_v2, %v3311_v54  ;;  %v2428_v10 = vadd.f32 %v2427_v6, %v2426_v5  ;;  %v2527_v13 = vpop.f32.mrb[46].mxu1 }
 0x152   :  { %v1178_v15 = vpop.f32.mrb[47].mxu1 }
 0x153   :  { %v1152_v14 = vadd.f32 %v2518_v30, %v1055_v37  ;;  %v1058_v40 = vadd.f32 %v2428_v10, %v3313_v57  ;;  %2548 = vmatprep.mubr.bf16.mxu1 %v1208_v9 }
 0x155   :  { %v1155_v16 = vadd.f32 %v2519_v34, %v1058_v40  ;;  %v2429_v50 = vpop.f32.mrb[48].mxu0  ;;  %v1196_v18 = vmax.f32 %v1152_v14, 0.0  ;;  %v2775_v14 = vld [vmem:[%s3555_s7 + $0x18] sm:$0xff]   ;;  %v2776_v40 = vld [vmem:[%s3555_s7 + $0x20] sm:$0xff]  }
 0x156   :  { %v2430_v17 = vpop.f32.mrb[49].mxu0 }
 0x157   :  { %v1197_v20 = vmax.f32 %v1155_v16, 0.0  ;;  %v2431_v21 = vadd.f32 %v2430_v17, %v2429_v50  ;;  %v2432_v23 = vpop.f32.mrb[50].mxu0  ;;  %v2155_v16 = vld [vmem:[%s3552_s4] ss:$0 sm:$0xff] }
 0x158   :  { %v2433_v24 = vpop.f32.mrb[51].mxu0 }
 0x159   :  { %v2434_v25 = vadd.f32 %v2433_v24, %v2432_v23  ;;  %v1063_v27 = vadd.f32 %v2431_v21, %v3317_v8  ;;  %v1209_v54 = vpack.c.bf16 %v1197_v20, %v1196_v18 }
 0x15b   :  { %v1160_v28 = vadd.f32 %v1159_v53, %v1063_v27  ;;  %2549 = vmatmul.mubr.bf16.gmra.mrb[52].mxu1 %v1209_v54  ;;  %v1066_v30 = vadd.f32 %v2434_v25, %v3319_v11 }
 0x15d   :  { %v1163_v31 = vadd.f32 %v1162_v58, %v1066_v30  ;;  %v2435_v57 = vpop.f32.mrb[52].mxu0  ;;  %v1198_v33 = vmax.f32 %v1160_v28, 0.0 }
 0x15e   :  { %v2436_v32 = vpop.f32.mrb[53].mxu0 }
 0x15f   :  { %v1199_v1 = vmax.f32 %v1163_v31, 0.0  ;;  %v2437_v34 = vadd.f32 %v2436_v32, %v2435_v57  ;;  %v2438_v35 = vpop.f32.mrb[54].mxu0 }
 0x160   :  { %v2439_v36 = vpop.f32.mrb[55].mxu0 }
 0x161   :  { %v1210_v4 = vpack.c.bf16 %v1199_v1, %v1198_v33  ;;  %v1071_v38 = vadd.f32 %v2437_v34, %v3323_v26  ;;  %v2440_v39 = vadd.f32 %v2439_v36, %v2438_v35 }
 0x163   :  { %v1168_v41 = vadd.f32 %v2522_v49, %v1071_v38  ;;  %v1074_v8 = vadd.f32 %v2440_v39, %v3325_v29  ;;  %2552 = vmatprep.mubr.bf16.mxu1 %v1210_v4 }
 0x165   :  { %v1171_v42 = vadd.f32 %v2523_v55, %v1074_v8  ;;  %v2441_v43 = vpop.f32.mrb[56].mxu0  ;;  %v1200_v11 = vmax.f32 %v1168_v41, 0.0 }
 0x166   :  { %v2442_v45 = vpop.f32.mrb[57].mxu0 }
 0x167   :  { %v1201_v46 = vmax.f32 %v1171_v42, 0.0  ;;  %v2443_v48 = vadd.f32 %v2442_v45, %v2441_v43  ;;  %v2444_v51 = vpop.f32.mrb[58].mxu0 }
 0x168   :  { %v2445_v52 = vpop.f32.mrb[59].mxu0 }
 0x169   :  { %v2446_v19 = vadd.f32 %v2445_v52, %v2444_v51  ;;  %v1079_v53 = vadd.f32 %v2443_v48, %v3329_v44  ;;  %v1211_v56 = vpack.c.bf16 %v1201_v46, %v1200_v11 }
 0x16b   :  { %v1176_v22 = vadd.f32 %v1175_v12, %v1079_v53  ;;  %2553 = vmatmul.mubr.bf16.gmra.mrb[56].mxu1 %v1211_v56  ;;  %v1082_v26 = vadd.f32 %v2446_v19, %v3331_v47  ;;  %v2770_v12 = vld [vmem:[%s3553_s5 + $0x30] sm:$0xff]  }
 0x16c   :  { %2572 = vmatprep.subr.bf16.mxu0 %v2770_v12 }
 0x16d   :  { %v1179_v49 = vadd.f32 %v1178_v15, %v1082_v26  ;;  %v2447_v58 = vpop.f32.mrb[60].mxu0  ;;  %v1202_v59 = vmax.f32 %v1176_v22, 0.0  ;;  %2573 = vmatpush3.bf16.msra.mxu0 %v2770_v12  ;;  %v2777_v15 = vld [vmem:[%s3555_s7 + $0x28] sm:$0xff]  }
 0x16e   :  { %v2448_v29 = vpop.f32.mrb[61].mxu0 }
 0x16f   :  { %v1203_v55 = vmax.f32 %v1179_v49, 0.0  ;;  %v2449_v60 = vadd.f32 %v2448_v29, %v2447_v58  ;;  %v2450_v61 = vpop.f32.mrb[62].mxu0 }
 0x170   :  { %v2451_v62 = vpop.f32.mrb[63].mxu0 }
 0x171   :  { %v1212_v0 = vpack.c.bf16 %v1203_v55, %v1202_v59  ;;  %v1087_v2 = vadd.f32 %v2449_v60, %v3335_v63  ;;  %v2452_v5 = vadd.f32 %v2451_v62, %v2450_v61  ;;  %v2771_v63 = vld [vmem:[%s3553_s5 + $0x38] sm:$0xff]  }
 0x172   :  { %2574 = vmatprep.subr.bf16.mxu0 %v2771_v63 }
 0x173   :  { %v1184_v6 = vadd.f32 %v3345_v7, %v1087_v2  ;;  %v1090_v44 = vadd.f32 %v2452_v5, %v3337_v3  ;;  %2556 = vmatprep.mubr.bf16.mxu1 %v1212_v0  ;;  %2575 = vmatpush3.bf16.msra.mxu0 %v2771_v63  ;;  %v2772_v3 = vld [vmem:[%s3555_s7] sm:$0xff]   ;;  %v2773_v7 = vld [vmem:[%s3555_s7 + $0x8] sm:$0xff]   ;;  %v2778_v63 = vld [vmem:[%s3555_s7 + $0x30] sm:$0xff]  }
 0x174   :  { %2592 = vmatprep.subr.bf16.mxu1 %v2772_v3 }
 0x175   :  { %v1187_v9 = vadd.f32 %v2527_v13, %v1090_v44  ;;  %v1204_v37 = vmax.f32 %v1184_v6, 0.0  ;;  %2593 = vmatpush3.bf16.msra.mxu1 %v2772_v3  ;;  %v2774_v13 = vld [vmem:[%s3555_s7 + $0x10] sm:$0xff]   ;;  %v2779_v3 = vld [vmem:[%s3555_s7 + $0x38] sm:$0xff]  }
 0x176   :  { %2594 = vmatprep.subr.bf16.mxu1 %v2773_v7 }
 0x177   :  { %v1205_v47 = vmax.f32 %v1187_v9, 0.0 }
 0x179   :  { %v1213_v10 = vpack.c.bf16 %v1205_v47, %v1204_v37  ;;  %2595 = vmatpush3.bf16.msra.mxu1 %v2773_v7  ;;  %v2164_v7 = vld [vmem:[%s3554_s6] ss:$0 sm:$0xff] }
 0x17a   :  { %2596 = vmatprep.subr.bf16.mxu1 %v2774_v13 }
 0x17b   :  { %2557 = vmatmul.mubr.bf16.gmra.mrb[60].mxu1 %v1213_v10 }
 0x17d   :  { %2597 = vmatpush3.bf16.msra.mxu1 %v2774_v13 }
 0x17e   :  { %2598 = vmatprep.subr.bf16.mxu1 %v2775_v14 }
 0x181   :  { %2599 = vmatpush3.bf16.msra.mxu1 %v2775_v14 }
 0x182   :  { %2600 = vmatprep.subr.bf16.mxu1 %v2776_v40 }
 0x185   :  { %2601 = vmatpush3.bf16.msra.mxu1 %v2776_v40 }
 0x186   :  { %2602 = vmatprep.subr.bf16.mxu1 %v2777_v15 }
 0x189   :  { %2603 = vmatpush3.bf16.msra.mxu1 %v2777_v15 }
 0x18a   :  { %2604 = vmatprep.subr.bf16.mxu1 %v2778_v63 }
 0x18d   :  { %2605 = vmatpush3.bf16.msra.mxu1 %v2778_v63 }
 0x18e   :  { %2606 = vmatprep.subr.bf16.mxu1 %v2779_v3 }
 0x191   :  { %2607 = vmatpush3.bf16.msra.mxu1 %v2779_v3 }
 0x21e   :  { %v2546_v50 = vpop.f32.mrb[48].mxu1 }
 0x21f   :  { %v1328_v17 = vadd.f32 %v2546_v50, %v2155_v16  ;;  %v1319_v18 = vpop.f32.mrb[49].mxu1 }
 0x220   :  { %v1320_v20 = vadd.f32 %v2155_v16, %v1319_v18  ;;  %v2547_v21 = vpop.f32.mrb[50].mxu1 }
 0x221   :  { %v1331_v23 = vadd.f32 %v2547_v21, %v2155_v16  ;;  %v1322_v24 = vpop.f32.mrb[51].mxu1  ;;  %v1384_v27 = vmax.f32 %v1328_v17, 0.0 }
 0x222   :  { %v1323_v25 = vadd.f32 %v2155_v16, %v1322_v24  ;;  %v1382_v28 = vmax.f32 %v1320_v20, 0.0 }
 0x223   :  { %v1385_v54 = vmax.f32 %v1331_v23, 0.0 }
 0x224   :  { %v1383_v30 = vmax.f32 %v1323_v25, 0.0 }
 0x225   :  { %v1399_v31 = vpack.c.bf16 %v1385_v54, %v1384_v27 }
 0x226   :  { %v1398_v57 = vpack.c.bf16 %v1383_v30, %v1382_v28 }
 0x228   :  { %2576 = vmatprep.mubr.bf16.mxu0 %v1398_v57 }
 0x229   :  { %2577 = vmatmul.mubr.bf16.vlgmr.msra.gmra.mrb[64].mxu0 %v1399_v31 }
 0x22e   :  { %v2550_v32 = vpop.f32.mrb[52].mxu1 }
 0x22f   :  { %v1344_v33 = vadd.f32 %v2550_v32, %v2155_v16  ;;  %v1335_v1 = vpop.f32.mrb[53].mxu1 }
 0x230   :  { %v1336_v34 = vadd.f32 %v2155_v16, %v1335_v1  ;;  %v2551_v35 = vpop.f32.mrb[54].mxu1 }
 0x231   :  { %v1347_v36 = vadd.f32 %v2551_v35, %v2155_v16  ;;  %v1338_v4 = vpop.f32.mrb[55].mxu1  ;;  %v1388_v39 = vmax.f32 %v1344_v33, 0.0 }
 0x232   :  { %v1339_v38 = vadd.f32 %v2155_v16, %v1338_v4  ;;  %v1386_v8 = vmax.f32 %v1336_v34, 0.0 }
 0x233   :  { %v1389_v41 = vmax.f32 %v1347_v36, 0.0 }
 0x234   :  { %v1387_v42 = vmax.f32 %v1339_v38, 0.0 }
 0x235   :  { %v1401_v43 = vpack.c.bf16 %v1389_v41, %v1388_v39 }
 0x236   :  { %v1400_v45 = vpack.c.bf16 %v1387_v42, %v1386_v8 }
 0x238   :  { %2580 = vmatprep.mubr.bf16.mxu0 %v1400_v45 }
 0x239   :  { %2581 = vmatmul.mubr.bf16.gmra.mrb[68].mxu0 %v1401_v43 }
 0x23e   :  { %v2554_v11 = vpop.f32.mrb[56].mxu1 }
 0x23f   :  { %v1360_v46 = vadd.f32 %v2554_v11, %v2155_v16  ;;  %v1351_v48 = vpop.f32.mrb[57].mxu1 }
 0x240   :  { %v1352_v51 = vadd.f32 %v2155_v16, %v1351_v48  ;;  %v2555_v52 = vpop.f32.mrb[58].mxu1 }
 0x241   :  { %v1363_v19 = vadd.f32 %v2555_v52, %v2155_v16  ;;  %v1354_v53 = vpop.f32.mrb[59].mxu1  ;;  %v1392_v22 = vmax.f32 %v1360_v46, 0.0 }
 0x242   :  { %v1355_v56 = vadd.f32 %v2155_v16, %v1354_v53  ;;  %v1390_v49 = vmax.f32 %v1352_v51, 0.0 }
 0x243   :  { %v1393_v26 = vmax.f32 %v1363_v19, 0.0 }
 0x244   :  { %v1391_v58 = vmax.f32 %v1355_v56, 0.0 }
 0x245   :  { %v1403_v29 = vpack.c.bf16 %v1393_v26, %v1392_v22 }
 0x246   :  { %v1402_v59 = vpack.c.bf16 %v1391_v58, %v1390_v49 }
 0x248   :  { %2584 = vmatprep.mubr.bf16.mxu0 %v1402_v59 }
 0x249   :  { %2585 = vmatmul.mubr.bf16.gmra.mrb[72].mxu0 %v1403_v29 }
 0x24e   :  { %v2558_v55 = vpop.f32.mrb[60].mxu1 }
 0x24f   :  { %v1376_v60 = vadd.f32 %v2558_v55, %v2155_v16  ;;  %v1367_v61 = vpop.f32.mrb[61].mxu1 }
 0x250   :  { %v1368_v62 = vadd.f32 %v2155_v16, %v1367_v61  ;;  %v2559_v0 = vpop.f32.mrb[62].mxu1 }
 0x251   :  { %v1379_v2 = vadd.f32 %v2559_v0, %v2155_v16  ;;  %v1370_v5 = vpop.f32.mrb[63].mxu1  ;;  %v1396_v44 = vmax.f32 %v1376_v60, 0.0 }
 0x252   :  { %v1371_v6 = vadd.f32 %v2155_v16, %v1370_v5  ;;  %v1394_v37 = vmax.f32 %v1368_v62, 0.0 }
 0x253   :  { %v1397_v9 = vmax.f32 %v1379_v2, 0.0 }
 0x254   :  { %v1395_v47 = vmax.f32 %v1371_v6, 0.0 }
 0x255   :  { %v1405_v10 = vpack.c.bf16 %v1397_v9, %v1396_v44  ;;  %v1766_v9 = vlaneseq }
 0x256   :  { %v1404_v12 = vpack.c.bf16 %v1395_v47, %v1394_v37  ;;  %v2173_v47 = vld [vmem:[%s3556_s8] ss:$0 sm:$0xff]  ;;  %s2868_s8 = smov [#allocation2]  }
 0x257   :  { %v3394_v37 = vand.u32 127, %v1766_v9  ;;  %s2030_s29 = sshll.u32 %s2868_s8, 4  ;;  %s2031_s29 = int_to_ptr.vmem [resolvable:$true] %s2030_s29 }
 0x258   :  { %2588 = vmatprep.mubr.bf16.mxu0 %v1404_v12  ;;  %s2844_s30 = scalar_lea.vmem %s2031_s29, 1024  ;;  %p2849_p1 = scmp.lt.s32.totalorder %s2031_s29, %s2031_s29 }
 0x259   :  { %2589 = vmatmul.mubr.bf16.gmra.mrb[76].mxu0 %v1405_v10  ;;  %vm1768_vm1 = vcmp.lt.s32.totalorder %v3394_v37, 10  ;;  %p2845_p0 = scmp.ne.s32.totalorder %s2031_s29, %s2844_s30  ;;  %p2850_p2 = scmp.lt.s32.totalorder %s2844_s30, %s2844_s30 }
 0x25b   :  { %p2851_p3 = por %p2850_p2, %p2849_p1 }
 0x25d   :  { %p2852_p4 = pnand %p2851_p3, %p2845_p0 }
 0x2fc   :  { %v2578_v13 = vpop.f32.mrb[64].mxu0 }
 0x2fd   :  { %v1520_v14 = vadd.f32 %v2578_v13, %v2164_v7  ;;  %v1511_v40 = vpop.f32.mrb[65].mxu0 }
 0x2fe   :  { %v1512_v15 = vadd.f32 %v2164_v7, %v1511_v40  ;;  %v2579_v16 = vpop.f32.mrb[66].mxu0 }
 0x2ff   :  { %v1523_v50 = vadd.f32 %v2579_v16, %v2164_v7  ;;  %v1514_v17 = vpop.f32.mrb[67].mxu0  ;;  %v1576_v20 = vmax.f32 %v1520_v14, 0.0 }
 0x300   :  { %v1515_v18 = vadd.f32 %v2164_v7, %v1514_v17  ;;  %v1574_v23 = vmax.f32 %v1512_v15, 0.0 }
 0x301   :  { %v1577_v21 = vmax.f32 %v1523_v50, 0.0 }
 0x302   :  { %v1575_v24 = vmax.f32 %v1515_v18, 0.0 }
 0x303   :  { %v1591_v25 = vpack.c.bf16 %v1577_v21, %v1576_v20 }
 0x304   :  { %v1590_v27 = vpack.c.bf16 %v1575_v24, %v1574_v23 }
 0x306   :  { %2608 = vmatprep.mubr.bf16.mxu1 %v1590_v27 }
 0x307   :  { %2609 = vmatmul.mubr.bf16.vlgmr.msra.gmra.mrb[64].mxu1 %v1591_v25 }
 0x30c   :  { %v2582_v54 = vpop.f32.mrb[68].mxu0 }
 0x30d   :  { %v1536_v28 = vadd.f32 %v2582_v54, %v2164_v7  ;;  %v1527_v30 = vpop.f32.mrb[69].mxu0 }
 0x30e   :  { %v1528_v31 = vadd.f32 %v2164_v7, %v1527_v30  ;;  %v2583_v57 = vpop.f32.mrb[70].mxu0 }
 0x30f   :  { %v1539_v32 = vadd.f32 %v2583_v57, %v2164_v7  ;;  %v1530_v33 = vpop.f32.mrb[71].mxu0  ;;  %v1580_v34 = vmax.f32 %v1536_v28, 0.0 }
 0x310   :  { %v1531_v1 = vadd.f32 %v2164_v7, %v1530_v33  ;;  %v1578_v36 = vmax.f32 %v1528_v31, 0.0 }
 0x311   :  { %v1581_v35 = vmax.f32 %v1539_v32, 0.0 }
 0x312   :  { %v1579_v4 = vmax.f32 %v1531_v1, 0.0 }
 0x313   :  { %v1593_v38 = vpack.c.bf16 %v1581_v35, %v1580_v34 }
 0x314   :  { %v1592_v39 = vpack.c.bf16 %v1579_v4, %v1578_v36 }
 0x316   :  { %2612 = vmatprep.mubr.bf16.mxu1 %v1592_v39 }
 0x317   :  { %2613 = vmatmul.mubr.bf16.gmra.mrb[68].mxu1 %v1593_v38 }
 0x31c   :  { %v2586_v41 = vpop.f32.mrb[72].mxu0 }
 0x31d   :  { %v1552_v8 = vadd.f32 %v2586_v41, %v2164_v7  ;;  %v1543_v42 = vpop.f32.mrb[73].mxu0 }
 0x31e   :  { %v1544_v43 = vadd.f32 %v2164_v7, %v1543_v42  ;;  %v2587_v45 = vpop.f32.mrb[74].mxu0 }
 0x31f   :  { %v1555_v11 = vadd.f32 %v2587_v45, %v2164_v7  ;;  %v1546_v46 = vpop.f32.mrb[75].mxu0  ;;  %v1584_v51 = vmax.f32 %v1552_v8, 0.0 }
 0x320   :  { %v1547_v48 = vadd.f32 %v2164_v7, %v1546_v46  ;;  %v1582_v19 = vmax.f32 %v1544_v43, 0.0 }
 0x321   :  { %v1585_v52 = vmax.f32 %v1555_v11, 0.0 }
 0x322   :  { %v1583_v53 = vmax.f32 %v1547_v48, 0.0 }
 0x323   :  { %v1595_v56 = vpack.c.bf16 %v1585_v52, %v1584_v51 }
 0x324   :  { %v1594_v22 = vpack.c.bf16 %v1583_v53, %v1582_v19 }
 0x326   :  { %2616 = vmatprep.mubr.bf16.mxu1 %v1594_v22 }
 0x327   :  { %2617 = vmatmul.mubr.bf16.gmra.mrb[72].mxu1 %v1595_v56 }
 0x32c   :  { %v2590_v26 = vpop.f32.mrb[76].mxu0 }
 0x32d   :  { %v1568_v49 = vadd.f32 %v2590_v26, %v2164_v7  ;;  %v1559_v58 = vpop.f32.mrb[77].mxu0 }
 0x32e   :  { %v1560_v29 = vadd.f32 %v2164_v7, %v1559_v58  ;;  %v2591_v59 = vpop.f32.mrb[78].mxu0 }
 0x32f   :  { %v1571_v55 = vadd.f32 %v2591_v59, %v2164_v7  ;;  %v1562_v60 = vpop.f32.mrb[79].mxu0  ;;  %v1588_v62 = vmax.f32 %v1568_v49, 0.0 }
 0x330   :  { %v1563_v61 = vadd.f32 %v2164_v7, %v1562_v60  ;;  %v1586_v2 = vmax.f32 %v1560_v29, 0.0 }
 0x331   :  { %v1589_v0 = vmax.f32 %v1571_v55, 0.0 }
 0x332   :  { %v1587_v5 = vmax.f32 %v1563_v61, 0.0 }
 0x333   :  { %v1597_v6 = vpack.c.bf16 %v1589_v0, %v1588_v62 }
 0x334   :  { %v1596_v44 = vpack.c.bf16 %v1587_v5, %v1586_v2 }
 0x336   :  { %2620 = vmatprep.mubr.bf16.mxu1 %v1596_v44 }
 0x337   :  { %2621 = vmatmul.mubr.bf16.gmra.mrb[76].mxu1 %v1597_v6 }
 0x3da   :  { %v2610_v10 = vpop.f32.mrb[64].mxu1 }
 0x3db   :  { %v1712_v12 = vadd.f32 %v2610_v10, %v2173_v47  ;;  %v1703_v63 = vpop.f32.mrb[65].mxu1 }
 0x3dc   :  { %v1704_v3 = vadd.f32 %v2173_v47, %v1703_v63  ;;  %v2611_v7 = vpop.f32.mrb[66].mxu1 }
 0x3dd   :  { %v1715_v13 = vadd.f32 %v2611_v7, %v2173_v47  ;;  %v1706_v14 = vpop.f32.mrb[67].mxu1  ;;  %v1771_v40 = vsel %vm1768_vm1, %v1712_v12, -inf }
 0x3de   :  { %v1707_v15 = vadd.f32 %v2173_v47, %v1706_v14  ;;  %1789 = vmax.xlane.f32.xlu1 %v1771_v40  ;;  %v1769_v16 = vsel %vm1768_vm1, %v1704_v3, -inf }
 0x3df   :  { %1785 = vmax.xlane.f32.xlu0 %v1769_v16  ;;  %v1772_v50 = vsel %vm1768_vm1, %v1715_v13, -inf }
 0x3e0   :  { %v1770_v17 = vsel %vm1768_vm1, %v1707_v15, -inf }
 0x3e2   :  { %1791 = vmax.xlane.f32.xlu1 %v1772_v50 }
 0x3e3   :  { %1787 = vmax.xlane.f32.xlu0 %v1770_v17 }
 0x3ea   :  { %v2614_v18 = vpop.f32.mrb[68].mxu1 }
 0x3eb   :  { %v1728_v20 = vadd.f32 %v2614_v18, %v2173_v47  ;;  %v1719_v21 = vpop.f32.mrb[69].mxu1 }
 0x3ec   :  { %v2615_v23 = vpop.f32.mrb[70].mxu1  ;;  %v1720_v24 = vadd.f32 %v2173_v47, %v1719_v21 }
 0x3ed   :  { %v1731_v25 = vadd.f32 %v2615_v23, %v2173_v47  ;;  %v1722_v27 = vpop.f32.mrb[71].mxu1  ;;  %v1775_v54 = vsel %vm1768_vm1, %v1728_v20, -inf }
 0x3ee   :  { %1797 = vmax.xlane.f32.xlu0 %v1775_v54  ;;  %v1723_v28 = vadd.f32 %v2173_v47, %v1722_v27  ;;  %v3414_v31 = vsel %vm1768_vm1, %v1720_v24, -inf }
 0x3ef   :  { %v1776_v30 = vsel %vm1768_vm1, %v1731_v25, -inf }
 0x3f0   :  { %1799 = vmax.xlane.f32.xlu1 %v1776_v30  ;;  %v3419_v57 = vsel %vm1768_vm1, %v1723_v28, -inf }
 0x3f2   :  { %1793 = vmax.xlane.f32.xlu0 %v3414_v31 }
 0x3f4   :  { %1795 = vmax.xlane.f32.xlu1 %v3419_v57 }
 0x3fa   :  { %v2618_v32 = vpop.f32.mrb[72].mxu1 }
 0x3fb   :  { %v1744_v33 = vadd.f32 %v2618_v32, %v2173_v47  ;;  %v1735_v1 = vpop.f32.mrb[73].mxu1 }
 0x3fc   :  { %v2619_v34 = vpop.f32.mrb[74].mxu1  ;;  %v1736_v35 = vadd.f32 %v2173_v47, %v1735_v1 }
 0x3fd   :  { %v1747_v36 = vadd.f32 %v2619_v34, %v2173_v47  ;;  %v1738_v4 = vpop.f32.mrb[75].mxu1  ;;  %v3424_v38 = vsel %vm1768_vm1, %v1744_v33, -inf }
 0x3fe   :  { %1805 = vmax.xlane.f32.xlu0 %v3424_v38  ;;  %v1739_v39 = vadd.f32 %v2173_v47, %v1738_v4  ;;  %v3434_v8 = vsel %vm1768_vm1, %v1736_v35, -inf }
 0x3ff   :  { %v3429_v41 = vsel %vm1768_vm1, %v1747_v36, -inf }
 0x400   :  { %1807 = vmax.xlane.f32.xlu1 %v3429_v41  ;;  %v3439_v42 = vsel %vm1768_vm1, %v1739_v39, -inf }
 0x402   :  { %1801 = vmax.xlane.f32.xlu0 %v3434_v8 }
 0x404   :  { %1803 = vmax.xlane.f32.xlu1 %v3439_v42 }
 0x40a   :  { %v2622_v43 = vpop.f32.mrb[76].mxu1 }
 0x40b   :  { %v1751_v45 = vpop.f32.mrb[77].mxu1  ;;  %v1760_v51 = vadd.f32 %v2622_v43, %v2173_v47 }
 0x40c   :  { %v1752_v11 = vadd.f32 %v2173_v47, %v1751_v45  ;;  %v2623_v46 = vpop.f32.mrb[78].mxu1 }
 0x40d   :  { %v1754_v48 = vpop.f32.mrb[79].mxu1  ;;  %v1763_v53 = vadd.f32 %v2623_v46, %v2173_v47  ;;  %v3454_v22 = vsel %vm1768_vm1, %v1760_v51, -inf }
 0x40e   :  { %v1755_v52 = vadd.f32 %v2173_v47, %v1754_v48  ;;  %v3444_v19 = vsel %vm1768_vm1, %v1752_v11, -inf }
 0x40f   :  { %1809 = vmax.xlane.f32.xlu0 %v3444_v19  ;;  %v3459_v26 = vsel %vm1768_vm1, %v1763_v53, -inf }
 0x410   :  { %v3449_v56 = vsel %vm1768_vm1, %v1755_v52, -inf }
 0x411   :  { %1811 = vmax.xlane.f32.xlu1 %v3449_v56 }
 0x413   :  { %1813 = vmax.xlane.f32.xlu0 %v3454_v22 }
 0x415   :  { %1815 = vmax.xlane.f32.xlu1 %v3459_v26 }
 0x46b   :  { %v1790_v49 = vpop.xlane.xlu1 %1789 }
 0x46c   :  { %v3462_v58 = vsub.f32 %v1771_v40, %v1790_v49  ;;  %v1786_v29 = vpop.xlane.xlu0 %1785 }
 0x46d   :  { %v3464_v59 = vsub.f32 %v1769_v16, %v1786_v29 }
 0x46e   :  { %v1837_v55 = vmul.f32 1.442695, %v3462_v58 }
 0x46f   :  { %v1833_v60 = vmul.f32 1.442695, %v3464_v59  ;;  %v1792_v61 = vpop.xlane.xlu1 %1791 }
 0x470   :  { %2780 = vpow2.f32 %v1837_v55  ;;  %v3468_v62 = vsub.f32 %v1772_v50, %v1792_v61  ;;  %v1788_v0 = vpop.xlane.xlu0 %1787 }
 0x471   :  { %v3470_v2 = vsub.f32 %v1770_v17, %v1788_v0  ;;  %2782 = vpow2.f32 %v1833_v60 }
 0x472   :  { %v1839_v5 = vmul.f32 1.442695, %v3468_v62 }
 0x473   :  { %v1835_v6 = vmul.f32 1.442695, %v3470_v2 }
 0x474   :  { %2784 = vpow2.f32 %v1839_v5 }
 0x475   :  { %2786 = vpow2.f32 %v1835_v6 }
 0x47a   :  { %v2781_v44 = vpop.eup %2780 }
 0x47b   :  { %1869 = vadd.xlane.f32.xlu0 %v2781_v44  ;;  %v1798_v9 = vpop.xlane.xlu0 %1797  ;;  %v2783_v47 = vpop.eup %2782 }
 0x47c   :  { %v3474_v37 = vsub.f32 %v1775_v54, %v1798_v9 }
 0x47d   :  { %v1800_v10 = vpop.xlane.xlu1 %1799 }
 0x47e   :  { %v2785_v12 = vpop.eup %2784  ;;  %v1845_v63 = vmul.f32 1.442695, %v3474_v37  ;;  %v3477_v3 = vsub.f32 %v1776_v30, %v1800_v10 }
 0x47f   :  { %1871 = vadd.xlane.f32.xlu1 %v2785_v12  ;;  %1865 = vadd.xlane.f32.xlu0 %v2783_v47  ;;  %v1794_v7 = vpop.xlane.xlu0 %1793  ;;  %v2787_v15 = vpop.eup %2786 }
 0x480   :  { %2788 = vpow2.f32 %v1845_v63  ;;  %v1847_v13 = vmul.f32 1.442695, %v3477_v3  ;;  %v3481_v14 = vsub.f32 %v3414_v31, %v1794_v7 }
 0x481   :  { %v1796_v40 = vpop.xlane.xlu1 %1795 }
 0x482   :  { %2790 = vpow2.f32 %v1847_v13  ;;  %v1841_v16 = vmul.f32 1.442695, %v3481_v14  ;;  %v3485_v50 = vsub.f32 %v3419_v57, %v1796_v40 }
 0x483   :  { %1867 = vadd.xlane.f32.xlu1 %v2787_v15 }
 0x484   :  { %2792 = vpow2.f32 %v1841_v16  ;;  %v1843_v17 = vmul.f32 1.442695, %v3485_v50 }
 0x486   :  { %2794 = vpow2.f32 %v1843_v17 }
 0x48a   :  { %v2789_v18 = vpop.eup %2788 }
 0x48b   :  { %1877 = vadd.xlane.f32.xlu0 %v2789_v18  ;;  %v1806_v20 = vpop.xlane.xlu0 %1805 }
 0x48c   :  { %v2791_v21 = vpop.eup %2790  ;;  %v3489_v23 = vsub.f32 %v3424_v38, %v1806_v20 }
 0x48d   :  { %v1808_v24 = vpop.xlane.xlu1 %1807  ;;  %1879 = vadd.xlane.f32.xlu1 %v2791_v21 }
 0x48e   :  { %v2793_v25 = vpop.eup %2792  ;;  %v1853_v27 = vmul.f32 1.442695, %v3489_v23  ;;  %v3493_v54 = vsub.f32 %v3429_v41, %v1808_v24 }
 0x48f   :  { %1873 = vadd.xlane.f32.xlu0 %v2793_v25  ;;  %v1802_v28 = vpop.xlane.xlu0 %1801 }
 0x490   :  { %v2795_v30 = vpop.eup %2794  ;;  %2796 = vpow2.f32 %v1853_v27  ;;  %v1855_v31 = vmul.f32 1.442695, %v3493_v54  ;;  %v3497_v57 = vsub.f32 %v3434_v8, %v1802_v28 }
 0x491   :  { %v1804_v32 = vpop.xlane.xlu1 %1803  ;;  %1875 = vadd.xlane.f32.xlu1 %v2795_v30 }
 0x492   :  { %2798 = vpow2.f32 %v1855_v31  ;;  %v1849_v33 = vmul.f32 1.442695, %v3497_v57  ;;  %v3501_v1 = vsub.f32 %v3439_v42, %v1804_v32 }
 0x494   :  { %2800 = vpow2.f32 %v1849_v33  ;;  %v1851_v34 = vmul.f32 1.442695, %v3501_v1 }
 0x496   :  { %2802 = vpow2.f32 %v1851_v34 }
 0x49a   :  { %v2797_v35 = vpop.eup %2796 }
 0x49b   :  { %1885 = vadd.xlane.f32.xlu0 %v2797_v35 }
 0x49c   :  { %v2799_v36 = vpop.eup %2798  ;;  %v1810_v4 = vpop.xlane.xlu0 %1809 }
 0x49d   :  { %v3505_v38 = vsub.f32 %v3444_v19, %v1810_v4  ;;  %1887 = vadd.xlane.f32.xlu1 %v2799_v36 }
 0x49e   :  { %v2801_v39 = vpop.eup %2800  ;;  %v1812_v41 = vpop.xlane.xlu1 %1811 }
 0x49f   :  { %v1857_v8 = vmul.f32 1.442695, %v3505_v38  ;;  %v3509_v43 = vsub.f32 %v3449_v56, %v1812_v41  ;;  %1881 = vadd.xlane.f32.xlu0 %v2801_v39 }
 0x4a0   :  { %v2803_v42 = vpop.eup %2802  ;;  %v1814_v45 = vpop.xlane.xlu0 %1813 }
 0x4a1   :  { %2804 = vpow2.f32 %v1857_v8  ;;  %v1859_v11 = vmul.f32 1.442695, %v3509_v43  ;;  %v3513_v46 = vsub.f32 %v3454_v22, %v1814_v45  ;;  %1883 = vadd.xlane.f32.xlu1 %v2803_v42 }
 0x4a2   :  { %v1816_v48 = vpop.xlane.xlu1 %1815 }
 0x4a3   :  { %2806 = vpow2.f32 %v1859_v11  ;;  %v1861_v51 = vmul.f32 1.442695, %v3513_v46  ;;  %v3517_v52 = vsub.f32 %v3459_v26, %v1816_v48 }
 0x4a5   :  { %2808 = vpow2.f32 %v1861_v51  ;;  %v1863_v19 = vmul.f32 1.442695, %v3517_v52 }
 0x4a7   :  { %2810 = vpow2.f32 %v1863_v19 }
 0x4ab   :  { %v2805_v53 = vpop.eup %2804 }
 0x4ac   :  { %1889 = vadd.xlane.f32.xlu0 %v2805_v53 }
 0x4ad   :  { %v2807_v56 = vpop.eup %2806 }
 0x4ae   :  { %1891 = vadd.xlane.f32.xlu1 %v2807_v56 }
 0x4af   :  { %v2809_v49 = vpop.eup %2808 }
 0x4b0   :  { %1893 = vadd.xlane.f32.xlu0 %v2809_v49 }
 0x4b1   :  { %v2811_v22 = vpop.eup %2810 }
 0x4b2   :  { %1895 = vadd.xlane.f32.xlu1 %v2811_v22 }
 0x508   :  { %v1870_v29 = vpop.xlane.xlu0 %1869 }
 0x509   :  { %2812 = vlog2.f32 %v1870_v29 }
 0x50c   :  { %v1872_v55 = vpop.xlane.xlu1 %1871  ;;  %v1866_v60 = vpop.xlane.xlu0 %1865 }
 0x50d   :  { %2814 = vlog2.f32 %v1872_v55 }
 0x50e   :  { %2816 = vlog2.f32 %v1866_v60 }
 0x510   :  { %v1868_v26 = vpop.xlane.xlu1 %1867 }
 0x511   :  { %2818 = vlog2.f32 %v1868_v26 }
 0x513   :  { %v2813_v61 = vpop.eup %2812 }
 0x514   :  { %v1902_v0 = vmul.f32 0.6931472, %v2813_v61 }
 0x516   :  { %v1931_v47 = vsub.f32 %v3462_v58, %v1902_v0 }
 0x517   :  { %v2815_v5 = vpop.eup %2814 }
 0x518   :  { %v2817_v6 = vpop.eup %2816  ;;  %v1904_v44 = vmul.f32 0.6931472, %v2815_v5  ;;  %v1878_v9 = vpop.xlane.xlu0 %1877 }
 0x519   :  { %2820 = vlog2.f32 %v1878_v9  ;;  %v1898_v12 = vmul.f32 0.6931472, %v2817_v6 }
 0x51a   :  { %v1932_v10 = vsub.f32 %v3468_v62, %v1904_v44  ;;  %v1880_v63 = vpop.xlane.xlu1 %1879 }
 0x51b   :  { %v2819_v7 = vpop.eup %2818  ;;  %2822 = vlog2.f32 %v1880_v63  ;;  %v1929_v16 = vsub.f32 %v3464_v59, %v1898_v12 }
 0x51c   :  { %v2222_v13 = vpack.c.bf16 %v1932_v10, %v1931_v47  ;;  %v1900_v40 = vmul.f32 0.6931472, %v2819_v7  ;;  %v1874_v15 = vpop.xlane.xlu0 %1873 }
 0x51d   :  { %2824 = vlog2.f32 %v1874_v15 }
 0x51e   :  { %2254 = vst [vmem:[#allocation2 + $0x8] sm:$0xff] %v2222_v13   ;;  %v1930_v17 = vsub.f32 %v3470_v2, %v1900_v40  ;;  %v1876_v18 = vpop.xlane.xlu1 %1875 }
 0x51f   :  { %2826 = vlog2.f32 %v1876_v18 }
 0x520   :  { %v2217_v20 = vpack.c.bf16 %v1930_v17, %v1929_v16 }
 0x522   :  { %2218 = vst [vmem:[#allocation2] sm:$0xff] %v2217_v20  }
 0x523   :  { %v2821_v58 = vpop.eup %2820 }
 0x524   :  { %v1910_v21 = vmul.f32 0.6931472, %v2821_v58 }
 0x525   :  { %v2823_v62 = vpop.eup %2822 }
 0x526   :  { %v1912_v24 = vmul.f32 0.6931472, %v2823_v62  ;;  %v1935_v27 = vsub.f32 %v3474_v37, %v1910_v21 }
 0x527   :  { %v2825_v25 = vpop.eup %2824 }
 0x528   :  { %v1936_v28 = vsub.f32 %v3477_v3, %v1912_v24  ;;  %v1906_v30 = vmul.f32 0.6931472, %v2825_v25  ;;  %v1886_v31 = vpop.xlane.xlu0 %1885 }
 0x529   :  { %v2827_v32 = vpop.eup %2826  ;;  %2828 = vlog2.f32 %v1886_v31 }
 0x52a   :  { %v2232_v59 = vpack.c.bf16 %v1936_v28, %v1935_v27  ;;  %v1908_v33 = vmul.f32 0.6931472, %v2827_v32  ;;  %v1888_v2 = vpop.xlane.xlu1 %1887  ;;  %v1933_v34 = vsub.f32 %v3481_v14, %v1906_v30 }
 0x52b   :  { %2830 = vlog2.f32 %v1888_v2 }
 0x52c   :  { %2256 = vst [vmem:[#allocation2 + $0x18] sm:$0xff] %v2232_v59   ;;  %v1934_v35 = vsub.f32 %v3485_v50, %v1908_v33  ;;  %v1882_v36 = vpop.xlane.xlu0 %1881 }
 0x52d   :  { %2832 = vlog2.f32 %v1882_v36 }
 0x52e   :  { %v2227_v4 = vpack.c.bf16 %v1934_v35, %v1933_v34  ;;  %v1884_v39 = vpop.xlane.xlu1 %1883 }
 0x52f   :  { %2834 = vlog2.f32 %v1884_v39 }
 0x530   :  { %2255 = vst [vmem:[#allocation2 + $0x10] sm:$0xff] %v2227_v4  }
 0x533   :  { %v2829_v37 = vpop.eup %2828 }
 0x534   :  { %v1918_v3 = vmul.f32 0.6931472, %v2829_v37 }
 0x535   :  { %v2831_v41 = vpop.eup %2830 }
 0x536   :  { %v1920_v8 = vmul.f32 0.6931472, %v2831_v41  ;;  %v1939_v45 = vsub.f32 %v3489_v23, %v1918_v3 }
 0x537   :  { %v2833_v42 = vpop.eup %2832 }
 0x538   :  { %v1940_v11 = vsub.f32 %v3493_v54, %v1920_v8  ;;  %v1914_v48 = vmul.f32 0.6931472, %v2833_v42 }
 0x539   :  { %v2835_v51 = vpop.eup %2834  ;;  %v1890_v14 = vpop.xlane.xlu0 %1889 }
 0x53a   :  { %v2242_v19 = vpack.c.bf16 %v1940_v11, %v1939_v45  ;;  %v1916_v50 = vmul.f32 0.6931472, %v2835_v51  ;;  %2836 = vlog2.f32 %v1890_v14  ;;  %v1937_v56 = vsub.f32 %v3497_v57, %v1914_v48 }
 0x53b   :  { %v1892_v53 = vpop.xlane.xlu1 %1891 }
 0x53c   :  { %2258 = vst [vmem:[#allocation2 + $0x28] sm:$0xff] %v2242_v19   ;;  %v1938_v49 = vsub.f32 %v3501_v1, %v1916_v50  ;;  %2838 = vlog2.f32 %v1892_v53 }
 0x53d   :  { %v1894_v22 = vpop.xlane.xlu0 %1893 }
 0x53e   :  { %v2237_v29 = vpack.c.bf16 %v1938_v49, %v1937_v56  ;;  %2840 = vlog2.f32 %v1894_v22 }
 0x53f   :  { %v1896_v55 = vpop.xlane.xlu1 %1895 }
 0x540   :  { %2257 = vst [vmem:[#allocation2 + $0x20] sm:$0xff] %v2237_v29   ;;  %2842 = vlog2.f32 %v1896_v55 }
 0x544   :  { %v2837_v23 = vpop.eup %2836 }
 0x545   :  { %v1922_v54 = vmul.f32 0.6931472, %v2837_v23 }
 0x546   :  { %v2839_v60 = vpop.eup %2838 }
 0x547   :  { %v1924_v26 = vmul.f32 0.6931472, %v2839_v60  ;;  %v1941_v0 = vsub.f32 %v3505_v38, %v1922_v54 }
 0x548   :  { %v2841_v61 = vpop.eup %2840 }
 0x549   :  { %v1942_v5 = vsub.f32 %v3509_v43, %v1924_v26  ;;  %v1926_v6 = vmul.f32 0.6931472, %v2841_v61 }
 0x54a   :  { %v2843_v57 = vpop.eup %2842 }
 0x54b   :  { %v2247_v44 = vpack.c.bf16 %v1942_v5, %v1941_v0  ;;  %v1928_v1 = vmul.f32 0.6931472, %v2843_v57  ;;  %v1943_v9 = vsub.f32 %v3513_v46, %v1926_v6 }
 0x54d   :  { %2259 = vst [vmem:[#allocation2 + $0x30] sm:$0xff] %v2247_v44   ;;  %v1944_v47 = vsub.f32 %v3517_v52, %v1928_v1 }
 0x54f   :  { %v2252_v10 = vpack.c.bf16 %v1944_v47, %v1943_v9 }
 0x551   :  { %2260 = vst [vmem:[#allocation2 + $0x38] sm:$0xff] %v2252_v10  }
 0x552   :  { %2855 = shalt.err (!%p2852_p4)
}
 0x553   :  { %s2856_s0 = scalar_lea.hbm %s3557_s9, 1024 }
 0x554   :  { %p2857_p5 = scmp.ne.s32.totalorder %s3557_s9, %s2856_s0  ;;  %p2860_p6 = scmp.lt.u32.totalorder %s2856_s0, %s3557_s9 }
 0x556   :  { %p2862_p7 = pnand %p2860_p6, %p2857_p5 }
 0x558   :  { %2865 = shalt.err (!%p2862_p7)
}
 0x559   :  { %s2869_s15 = smov 64   ;;  %s2870_s16 = smov 4  }
 0x55a   :  { %2036 = dma.vmem_to_hbm [thread:$0]  %s2031_s29, 1024, %s3557_s9, [#allocation3], %s2869_s15, %s2869_s15, %s2870_s16  }
 0x55b   :  { %2866 = dma.done.wait [#allocation3], 1024  }
 0x55c   :  { %2867 = vsyncadd [#allocation3], 4294966272 }
 0x55d   :  { %2040 = vsyncpa [#allocation3], 1 }

</bundles_post_ra>
